<compile_context>
chip_gen: v5e
topology: v5e:2x2
jax: 0.10.0
libtpu: 0.0.40
codegen_flags: <defaults>
</compile_context>

<pallas_src>
import functools

import numpy as np
import jax
import jax.numpy as jnp
from jax.experimental import pallas as pl
from jax.experimental.pallas import tpu as pltpu

LANE = 128                      # lane-dense output-channel padding
TM = 512                        # M tile (rows) for pipelined GEMMs
VMEM_LIMIT = 32 * 1024 * 1024   # bytes; safe on v5e/v6e/v7x


# ------------------------------ Pallas kernels ------------------------------ #
def _gemm_bias_act_kernel(x_ref, w_ref, b_ref, o_ref, *, act):
    """o = act(x @ w + b). x:(tm,K) bf16, w:(K,N) bf16, b:(1,N) f32, o:(tm,N)."""
    y = jnp.dot(x_ref[...], w_ref[...], preferred_element_type=jnp.float32)
    y = y + b_ref[...]
    if act == "relu":
        y = jnp.maximum(y, 0.0)
    elif act == "sigmoid":
        # exp + reciprocal both live on the EUP slot (free next to the MXU).
        y = pl.reciprocal(1.0 + jnp.exp(-y), approx=True)
    o_ref[...] = y.astype(o_ref.dtype)


def _fc_fused_kernel(x_ref, w1_ref, b1_ref, w2_ref, b2_ref, lat_ref, dec_ref):
    """Fused fc1 + fc2: latent = x@w1+b1 ; dec = latent@w2+b2 (latent in VMEM)."""
    lat = jnp.dot(x_ref[...], w1_ref[...], preferred_element_type=jnp.float32)
    lat = lat + b1_ref[...]
    lat_ref[...] = lat.astype(lat_ref.dtype)
    dec = jnp.dot(lat.astype(jnp.bfloat16), w2_ref[...],
                  preferred_element_type=jnp.float32)
    dec = dec + b2_ref[...]
    dec_ref[...] = dec.astype(dec_ref.dtype)


# ------------------------------ Pallas wrappers ------------------------------ #
def _m_tiling(m, tm):
    """Return (block_m, padded_m). Full block if small, else 8-aligned tiles."""
    if m > tm:
        return tm, pl.cdiv(m, tm) * tm
    return m, m


def gemm_bias_act(x, w, b, act, out_dtype, tm=TM):
    """act(x @ w + b) with bf16 MXU inputs, f32 accumulation, M-tiled grid."""
    M, K = x.shape
    Kw, N = w.shape
    assert K == Kw, (K, Kw)
    bm, Mp = _m_tiling(M, tm)
    x = x.astype(jnp.bfloat16)
    if Mp != M:
        x = jnp.pad(x, ((0, Mp - M), (0, 0)))
    out = pl.pallas_call(
        functools.partial(_gemm_bias_act_kernel, act=act),
        out_shape=jax.ShapeDtypeStruct((Mp, N), out_dtype),
        grid=(Mp // bm,),
        in_specs=[
            pl.BlockSpec((bm, K), lambda i: (i, 0)),
            pl.BlockSpec((K, N), lambda i: (0, 0)),      # weights resident
            pl.BlockSpec((1, N), lambda i: (0, 0)),      # 128-lane bias row
        ],
        out_specs=pl.BlockSpec((bm, N), lambda i: (i, 0)),
        compiler_params=pltpu.CompilerParams(
            dimension_semantics=("parallel",),           # v7x megacore split
            vmem_limit_bytes=VMEM_LIMIT),
    )(x, w.astype(jnp.bfloat16), b.reshape(1, N).astype(jnp.float32))
    return out if Mp == M else out[:M]


def fc_fused(x, w1, b1, w2, b2, tm=TM):
    """latent = x@w1+b1 ; dec = latent@w2+b2, one Pallas call, two outputs."""
    M, K = x.shape
    N1 = w1.shape[1]
    N2 = w2.shape[1]
    bm, Mp = _m_tiling(M, tm)
    x = x.astype(jnp.bfloat16)
    if Mp != M:
        x = jnp.pad(x, ((0, Mp - M), (0, 0)))
    lat, dec = pl.pallas_call(
        _fc_fused_kernel,
        out_shape=(jax.ShapeDtypeStruct((Mp, N1), jnp.float32),
                   jax.ShapeDtypeStruct((Mp, N2), jnp.bfloat16)),
        grid=(Mp // bm,),
        in_specs=[
            pl.BlockSpec((bm, K), lambda i: (i, 0)),
            pl.BlockSpec((K, N1), lambda i: (0, 0)),
            pl.BlockSpec((1, N1), lambda i: (0, 0)),
            pl.BlockSpec((N1, N2), lambda i: (0, 0)),
            pl.BlockSpec((1, N2), lambda i: (0, 0)),
        ],
        out_specs=(pl.BlockSpec((bm, N1), lambda i: (i, 0)),
                   pl.BlockSpec((bm, N2), lambda i: (i, 0))),
        compiler_params=pltpu.CompilerParams(
            dimension_semantics=("parallel",),
            vmem_limit_bytes=VMEM_LIMIT),
    )(x, w1.astype(jnp.bfloat16), b1.reshape(1, N1).astype(jnp.float32),
      w2.astype(jnp.bfloat16), b2.reshape(1, N2).astype(jnp.float32))
    if Mp != M:
        lat, dec = lat[:M], dec[:M]
    return lat, dec


# ----------------------------- XLA layout glue ------------------------------ #
def _im2col(x_nhwc, k, stride, pad):
    """k x k patches -> (B*OH*OW, k*k*C); patch order (ki, kj, c)."""
    B, H, W, C = x_nhwc.shape
    xp = jnp.pad(x_nhwc, ((0, 0), (pad, pad), (pad, pad), (0, 0)))
    OH = (H + 2 * pad - k) // stride + 1
    OW = (W + 2 * pad - k) // stride + 1
    cols = [xp[:, i:i + stride * OH:stride, j:j + stride * OW:stride, :]
            for i in range(k) for j in range(k)]
    patches = jnp.stack(cols, axis=3)                   # (B, OH, OW, k*k, C)
    return patches.reshape(B * OH * OW, k * k * C), (B, OH, OW)


def _phase_patches(x_nhwc):
    """2x2 forward taps for the sub-pixel (phase) transposed conv.

    Rows ordered (ty*2+tx)*C + c, taps x[m+ty, n+tx] with zero pad on the
    bottom/right edge.  Output: (B*H*W, 4*C).
    """
    B, H, W, C = x_nhwc.shape
    xp = jnp.pad(x_nhwc, ((0, 0), (0, 1), (0, 1), (0, 0)))
    taps = [xp[:, ty:ty + H, tx:tx + W, :] for ty in (0, 1) for tx in (0, 1)]
    patches = jnp.stack(taps, axis=3)                   # (B, H, W, 4, C)
    return patches.reshape(B * H * W, 4 * C), (B, H, W)


def conv2d_gemm(x_nhwc, w_packed, b_packed, cout, k, stride, pad, act, out_dtype):
    patches, (B, OH, OW) = _im2col(x_nhwc, k, stride, pad)
    Kw = w_packed.shape[0]
    if patches.shape[1] < Kw:                           # K padded to mult of 8
        patches = jnp.pad(patches, ((0, 0), (0, Kw - patches.shape[1])))
    y = gemm_bias_act(patches, w_packed, b_packed, act, out_dtype)
    return y[:, :cout].reshape(B, OH, OW, cout)


def deconv2x_gemm(x_nhwc, w_packed, b_packed, cout, cout_pad, act, out_dtype):
    """ConvTranspose2d(k=3, s=2, p=1, op=1) as a single phase GEMM + shuffle."""
    patches, (B, H, W) = _phase_patches(x_nhwc)
    y = gemm_bias_act(patches, w_packed, b_packed, act, out_dtype)
    y = y.reshape(B, H, W, 2, 2, cout_pad)[..., :cout]   # (b,m,n,dy,dx,c)
    y = jnp.transpose(y, (0, 1, 3, 2, 4, 5)).reshape(B, 2 * H, 2 * W, cout)
    return y


# ------------------------------ parameters ---------------------------------- #
def init_params(key, latent_dim=32):
    """Raw PyTorch-layout parameters (same init scheme as the previous version)."""
    def uinit(k, shape, fan_in):
        bound = 1.0 / jnp.sqrt(jnp.float32(fan_in))
        return jax.random.uniform(k, shape, jnp.float32, -bound, bound)

    ks = jax.random.split(key, 12)
    p = {}
    p["enc1_w"] = uinit(ks[0], (16, 1, 3, 3), 1 * 9)        # Conv2d(1,16,3)
    p["enc1_b"] = uinit(ks[1], (16,), 1 * 9)
    p["enc2_w"] = uinit(ks[2], (32, 16, 3, 3), 16 * 9)      # Conv2d(16,32,3)
    p["enc2_b"] = uinit(ks[3], (32,), 16 * 9)
    p["fc1_w"] = uinit(ks[4], (latent_dim, 32 * 7 * 7), 32 * 7 * 7)
    p["fc1_b"] = uinit(ks[5], (latent_dim,), 32 * 7 * 7)
    p["fc2_w"] = uinit(ks[6], (32 * 7 * 7, latent_dim), latent_dim)
    p["fc2_b"] = uinit(ks[7], (32 * 7 * 7,), latent_dim)
    p["dec1_w"] = uinit(ks[8], (32, 16, 3, 3), 32 * 9)      # ConvT: (Cin,Cout,kH,kW)
    p["dec1_b"] = uinit(ks[9], (16,), 32 * 9)
    p["dec2_w"] = uinit(ks[10], (16, 1, 3, 3), 16 * 9)      # ConvT(16,1,3)
    p["dec2_b"] = uinit(ks[11], (1,), 16 * 9)
    return p


def pack_params(p):
    """One-time weight packing (outside jit): GEMM layouts, lane/sublane padding,
    fc permutations absorbing the NCHW flatten, phase-decomposed deconv weights."""
    q = {k: np.asarray(v, np.float32) for k, v in p.items()}
    out = {}

    # --- encoder convs: (Cout,Cin,3,3) -> (kH*kW*Cin, Cout), pad K->8k, N->128
    for name in ("enc1", "enc2"):
        w, b = q[name + "_w"], q[name + "_b"]
        Cout, Cin, kH, kW = w.shape
        w2 = w.transpose(2, 3, 1, 0).reshape(kH * kW * Cin, Cout)
        kpad = -(-w2.shape[0] // 8) * 8
        w2 = np.pad(w2, ((0, kpad - w2.shape[0]), (0, LANE - Cout)))
        out[name + "_w"] = jnp.asarray(w2, jnp.bfloat16)
        out[name + "_b"] = jnp.asarray(np.pad(b, (0, LANE - Cout)), jnp.float32)

    # --- fc1: rows permuted so it consumes the NHWC-ordered flatten directly
    w1 = q["fc1_w"]                                    # (L, 1568), in idx = c*49+h*7+w
    L = w1.shape[0]
    w1p = w1.reshape(L, 32, 7, 7).transpose(2, 3, 1, 0).reshape(32 * 7 * 7, L)
    out["fc1_w"] = jnp.asarray(w1p, jnp.bfloat16)
    out["fc1_b"] = jnp.asarray(q["fc1_b"], jnp.float32)

    # --- fc2: columns permuted so its output reshapes straight to NHWC (B,7,7,32)
    w2 = q["fc2_w"]                                    # (1568, L), out idx = c*49+h*7+w
    w2p = w2.reshape(32, 7, 7, L).transpose(3, 1, 2, 0).reshape(L, 32 * 7 * 7)
    out["fc2_w"] = jnp.asarray(w2p, jnp.bfloat16)
    b2p = q["fc2_b"].reshape(32, 7, 7).transpose(1, 2, 0).reshape(-1)
    out["fc2_b"] = jnp.asarray(b2p, jnp.float32)

    # --- transposed convs (k=3, s=2, p=1, op=1) -> 4-phase weights
    # output (2m+dy, 2n+dx) uses kernel tap ki(dy,ty), kj(dx,tx):
    #   (d=0,t=0)->1, (d=1,t=0)->2, (d=1,t=1)->0, (d=0,t=1)-> unused
    kmap = {(0, 0): 1, (1, 0): 2, (1, 1): 0}
    for name, cpad in (("dec1", 32), ("dec2", 32)):
        w, b = q[name + "_w"], q[name + "_b"]          # (Cin, Cout, 3, 3)
        Cin, Cout = w.shape[0], w.shape[1]
        wp = np.zeros((4 * Cin, 4 * cpad), np.float32)
        bp = np.zeros((4 * cpad,), np.float32)
        for dy in (0, 1):
            for dx in (0, 1):
                c0 = (dy * 2 + dx) * cpad
                bp[c0:c0 + Cout] = b
                for ty in (0, 1):
                    for tx in (0, 1):
                        ki = kmap.get((dy, ty))
                        kj = kmap.get((dx, tx))
                        if ki is None or kj is None:
                            continue
                        r0 = (ty * 2 + tx) * Cin
                        wp[r0:r0 + Cin, c0:c0 + Cout] = w[:, :, ki, kj]
        out[name + "_w"] = jnp.asarray(wp, jnp.bfloat16)
        out[name + "_b"] = jnp.asarray(bp, jnp.float32)
    return out


# -------------------------------- forward ----------------------------------- #
def sparse_conv_autoencoder_forward(packed, x_nchw):
    B = x_nchw.shape[0]
    x = jnp.transpose(x_nchw, (0, 2, 3, 1)).astype(jnp.bfloat16)      # NHWC

    h = conv2d_gemm(x, packed["enc1_w"], packed["enc1_b"],
                    16, 3, 2, 1, "relu", jnp.bfloat16)                # (B,14,14,16)
    h = conv2d_gemm(h, packed["enc2_w"], packed["enc2_b"],
                    32, 3, 2, 1, "relu", jnp.bfloat16)                # (B,7,7,32)

    # fc weights were pre-permuted: plain reshape == PyTorch's NCHW flatten.
    flat = h.reshape(B, 7 * 7 * 32)
    latent, dec = fc_fused(flat, packed["fc1_w"], packed["fc1_b"],
                           packed["fc2_w"], packed["fc2_b"])          # (B,32),(B,1568)
    d = dec.reshape(B, 7, 7, 32)                                      # already NHWC

    d = deconv2x_gemm(d, packed["dec1_w"], packed["dec1_b"],
                      16, 32, "relu", jnp.bfloat16)                   # (B,14,14,16)
    d = deconv2x_gemm(d, packed["dec2_w"], packed["dec2_b"],
                      1, 32, "sigmoid", jnp.float32)                  # (B,28,28,1)

    decoded = jnp.transpose(d, (0, 3, 1, 2))                          # NCHW
    return decoded, latent


if __name__ == "__main__":
    key = jax.random.PRNGKey(0)
    k_param, k_x = jax.random.split(key)
    raw_params = init_params(k_param, latent_dim=32)
    packed = pack_params(raw_params)                  # one-time, outside jit
    # Module implies 28x28 single-channel input (fc1 expects 32*7*7 features).
    x = jax.random.uniform(k_x, (2, 1, 28, 28), jnp.float32)

    fwd = jax.jit(sparse_conv_autoencoder_forward)
    decoded, latent = fwd(packed, x)
    jax.block_until_ready((decoded, latent))

    assert decoded.shape == (2, 1, 28, 28), decoded.shape
    assert latent.shape == (2, 32), latent.shape
    assert decoded.dtype == jnp.float32 and latent.dtype == jnp.float32
    assert bool(jnp.all(jnp.isfinite(decoded))) and bool(jnp.all(jnp.isfinite(latent)))
    print("KERNEL_OK")
</pallas_src>

<mosaic_0001>
module attributes {stable_mosaic.version = 11 : i64} {
  func.func @_gemm_bias_act_kernel(%arg0: i32, %arg1: memref<392x16xbf16, #tpu.memory_space<vmem>>, %arg2: memref<16x128xbf16, #tpu.memory_space<vmem>>, %arg3: memref<1x128xf32, #tpu.memory_space<vmem>>, %arg4: memref<392x128xbf16, #tpu.memory_space<vmem>>) attributes {dimension_semantics = [#tpu.dimension_semantics<parallel>], iteration_bounds = array<i64: 1>, scalar_prefetch = 0 : i64, scratch_operands = 0 : i64, tpu.core_type = #tpu.core_type<tc>, window_params = [{transform_indices = @transform_0, window_bounds = array<i64: 392, 16>}, {pipeline_mode = #tpu.pipeline_mode<synchronous>, transform_indices = @transform_1, window_bounds = array<i64: 16, 128>}, {pipeline_mode = #tpu.pipeline_mode<synchronous>, transform_indices = @transform_2, window_bounds = array<i64: 1, 128>}, {transform_indices = @transform_3, window_bounds = array<i64: 392, 128>}]} {
    %c0 = arith.constant 0 : index
    %c0_0 = arith.constant 0 : index
    %0 = vector.load %arg1[%c0, %c0_0] : memref<392x16xbf16, #tpu.memory_space<vmem>>, vector<392x16xbf16>
    %c0_1 = arith.constant 0 : index
    %c0_2 = arith.constant 0 : index
    %1 = vector.load %arg2[%c0_1, %c0_2] : memref<16x128xbf16, #tpu.memory_space<vmem>>, vector<16x128xbf16>
    %cst = arith.constant dense<0.000000e+00> : vector<392x128xf32>
    %2 = tpu.matmul %0, %1, %cst {dimension_numbers = #tpu.dot_dimension_numbers<[1], [0], [0], [1], [0, 0, 1, 1], [], []>} : vector<392x16xbf16>, vector<16x128xbf16>, vector<392x128xf32> -> vector<392x128xf32>
    %c0_3 = arith.constant 0 : index
    %c0_4 = arith.constant 0 : index
    %3 = vector.load %arg3[%c0_3, %c0_4] : memref<1x128xf32, #tpu.memory_space<vmem>>, vector<1x128xf32>
    %4 = vector.broadcast %3 : vector<1x128xf32> to vector<392x128xf32>
    %5 = arith.addf %2, %4 : vector<392x128xf32>
    %cst_5 = arith.constant 0.000000e+00 : f32
    %6 = vector.broadcast %cst_5 : f32 to vector<392x128xf32>
    %7 = arith.maximumf %5, %6 : vector<392x128xf32>
    %8 = arith.truncf %7 : vector<392x128xf32> to vector<392x128xbf16>
    %c0_6 = arith.constant 0 : index
    %c0_7 = arith.constant 0 : index
    %9 = vector.load %arg4[%c0_6, %c0_7] : memref<392x128xbf16, #tpu.memory_space<vmem>>, vector<392x128xbf16>
    tpu.vector_store %arg4[%c0_6, %c0_7], %8 {strides = array<i32>} : memref<392x128xbf16, #tpu.memory_space<vmem>>, vector<392x128xbf16>,
    return
  }
  func.func @transform_0(%arg0: i32) -> (i32, i32) {
    %c0_i32 = arith.constant 0 : i32
    %c0_i32_0 = arith.constant 0 : i32
    return %arg0, %c0_i32 : i32, i32
  }
  func.func @transform_1(%arg0: i32) -> (i32, i32) {
    %c0_i32 = arith.constant 0 : i32
    %c0_i32_0 = arith.constant 0 : i32
    %c0_i32_1 = arith.constant 0 : i32
    return %c0_i32, %c0_i32_0 : i32, i32
  }
  func.func @transform_2(%arg0: i32) -> (i32, i32) {
    %c0_i32 = arith.constant 0 : i32
    %c0_i32_0 = arith.constant 0 : i32
    %c0_i32_1 = arith.constant 0 : i32
    return %c0_i32, %c0_i32_0 : i32, i32
  }
  func.func @transform_3(%arg0: i32) -> (i32, i32) {
    %c0_i32 = arith.constant 0 : i32
    %c0_i32_0 = arith.constant 0 : i32
    return %arg0, %c0_i32 : i32, i32
  }
}

module attributes {stable_mosaic.version = 11 : i64} {
  func.func @_gemm_bias_act_kernel(%arg0: i32, %arg1: memref<98x144xbf16, #tpu.memory_space<vmem>>, %arg2: memref<144x128xbf16, #tpu.memory_space<vmem>>, %arg3: memref<1x128xf32, #tpu.memory_space<vmem>>, %arg4: memref<98x128xbf16, #tpu.memory_space<vmem>>) attributes {dimension_semantics = [#tpu.dimension_semantics<parallel>], iteration_bounds = array<i64: 1>, scalar_prefetch = 0 : i64, scratch_operands = 0 : i64, tpu.core_type = #tpu.core_type<tc>, window_params = [{transform_indices = @transform_0, window_bounds = array<i64: 98, 144>}, {pipeline_mode = #tpu.pipeline_mode<synchronous>, transform_indices = @transform_1, window_bounds = array<i64: 144, 128>}, {pipeline_mode = #tpu.pipeline_mode<synchronous>, transform_indices = @transform_2, window_bounds = array<i64: 1, 128>}, {transform_indices = @transform_3, window_bounds = array<i64: 98, 128>}]} {
    %c0 = arith.constant 0 : index
    %c0_0 = arith.constant 0 : index
    %0 = vector.load %arg1[%c0, %c0_0] : memref<98x144xbf16, #tpu.memory_space<vmem>>, vector<98x144xbf16>
    %c0_1 = arith.constant 0 : index
    %c0_2 = arith.constant 0 : index
    %1 = vector.load %arg2[%c0_1, %c0_2] : memref<144x128xbf16, #tpu.memory_space<vmem>>, vector<144x128xbf16>
    %cst = arith.constant dense<0.000000e+00> : vector<98x128xf32>
    %2 = tpu.matmul %0, %1, %cst {dimension_numbers = #tpu.dot_dimension_numbers<[1], [0], [0], [1], [0, 0, 1, 1], [], []>} : vector<98x144xbf16>, vector<144x128xbf16>, vector<98x128xf32> -> vector<98x128xf32>
    %c0_3 = arith.constant 0 : index
    %c0_4 = arith.constant 0 : index
    %3 = vector.load %arg3[%c0_3, %c0_4] : memref<1x128xf32, #tpu.memory_space<vmem>>, vector<1x128xf32>
    %4 = vector.broadcast %3 : vector<1x128xf32> to vector<98x128xf32>
    %5 = arith.addf %2, %4 : vector<98x128xf32>
    %cst_5 = arith.constant 0.000000e+00 : f32
    %6 = vector.broadcast %cst_5 : f32 to vector<98x128xf32>
    %7 = arith.maximumf %5, %6 : vector<98x128xf32>
    %8 = arith.truncf %7 : vector<98x128xf32> to vector<98x128xbf16>
    %c0_6 = arith.constant 0 : index
    %c0_7 = arith.constant 0 : index
    %9 = vector.load %arg4[%c0_6, %c0_7] : memref<98x128xbf16, #tpu.memory_space<vmem>>, vector<98x128xbf16>
    tpu.vector_store %arg4[%c0_6, %c0_7], %8 {strides = array<i32>} : memref<98x128xbf16, #tpu.memory_space<vmem>>, vector<98x128xbf16>,
    return
  }
  func.func @transform_0(%arg0: i32) -> (i32, i32) {
    %c0_i32 = arith.constant 0 : i32
    %c0_i32_0 = arith.constant 0 : i32
    return %arg0, %c0_i32 : i32, i32
  }
  func.func @transform_1(%arg0: i32) -> (i32, i32) {
    %c0_i32 = arith.constant 0 : i32
    %c0_i32_0 = arith.constant 0 : i32
    %c0_i32_1 = arith.constant 0 : i32
    return %c0_i32, %c0_i32_0 : i32, i32
  }
  func.func @transform_2(%arg0: i32) -> (i32, i32) {
    %c0_i32 = arith.constant 0 : i32
    %c0_i32_0 = arith.constant 0 : i32
    %c0_i32_1 = arith.constant 0 : i32
    return %c0_i32, %c0_i32_0 : i32, i32
  }
  func.func @transform_3(%arg0: i32) -> (i32, i32) {
    %c0_i32 = arith.constant 0 : i32
    %c0_i32_0 = arith.constant 0 : i32
    return %arg0, %c0_i32 : i32, i32
  }
}

module attributes {stable_mosaic.version = 11 : i64} {
  func.func @_fc_fused_kernel(%arg0: i32, %arg1: memref<2x1568xbf16, #tpu.memory_space<vmem>>, %arg2: memref<1568x32xbf16, #tpu.memory_space<vmem>>, %arg3: memref<1x32xf32, #tpu.memory_space<vmem>>, %arg4: memref<32x1568xbf16, #tpu.memory_space<vmem>>, %arg5: memref<1x1568xf32, #tpu.memory_space<vmem>>, %arg6: memref<2x32xf32, #tpu.memory_space<vmem>>, %arg7: memref<2x1568xbf16, #tpu.memory_space<vmem>>) attributes {dimension_semantics = [#tpu.dimension_semantics<parallel>], iteration_bounds = array<i64: 1>, scalar_prefetch = 0 : i64, scratch_operands = 0 : i64, tpu.core_type = #tpu.core_type<tc>, window_params = [{transform_indices = @transform_0, window_bounds = array<i64: 2, 1568>}, {pipeline_mode = #tpu.pipeline_mode<synchronous>, transform_indices = @transform_1, window_bounds = array<i64: 1568, 32>}, {pipeline_mode = #tpu.pipeline_mode<synchronous>, transform_indices = @transform_2, window_bounds = array<i64: 1, 32>}, {pipeline_mode = #tpu.pipeline_mode<synchronous>, transform_indices = @transform_3, window_bounds = array<i64: 32, 1568>}, {pipeline_mode = #tpu.pipeline_mode<synchronous>, transform_indices = @transform_4, window_bounds = array<i64: 1, 1568>}, {transform_indices = @transform_5, window_bounds = array<i64: 2, 32>}, {transform_indices = @transform_6, window_bounds = array<i64: 2, 1568>}]} {
    %c0 = arith.constant 0 : index
    %c0_0 = arith.constant 0 : index
    %0 = vector.load %arg1[%c0, %c0_0] : memref<2x1568xbf16, #tpu.memory_space<vmem>>, vector<2x1568xbf16>
    %c0_1 = arith.constant 0 : index
    %c0_2 = arith.constant 0 : index
    %1 = vector.load %arg2[%c0_1, %c0_2] : memref<1568x32xbf16, #tpu.memory_space<vmem>>, vector<1568x32xbf16>
    %cst = arith.constant dense<0.000000e+00> : vector<2x32xf32>
    %2 = tpu.matmul %0, %1, %cst {dimension_numbers = #tpu.dot_dimension_numbers<[1], [0], [0], [1], [0, 0, 1, 1], [], []>} : vector<2x1568xbf16>, vector<1568x32xbf16>, vector<2x32xf32> -> vector<2x32xf32>
    %c0_3 = arith.constant 0 : index
    %c0_4 = arith.constant 0 : index
    %3 = vector.load %arg3[%c0_3, %c0_4] : memref<1x32xf32, #tpu.memory_space<vmem>>, vector<1x32xf32>
    %4 = vector.broadcast %3 : vector<1x32xf32> to vector<2x32xf32>
    %5 = arith.addf %2, %4 : vector<2x32xf32>
    %c0_5 = arith.constant 0 : index
    %c0_6 = arith.constant 0 : index
    %6 = vector.load %arg6[%c0_5, %c0_6] : memref<2x32xf32, #tpu.memory_space<vmem>>, vector<2x32xf32>
    tpu.vector_store %arg6[%c0_5, %c0_6], %5 {strides = array<i32>} : memref<2x32xf32, #tpu.memory_space<vmem>>, vector<2x32xf32>,
    %7 = arith.truncf %5 : vector<2x32xf32> to vector<2x32xbf16>
    %c0_7 = arith.constant 0 : index
    %c0_8 = arith.constant 0 : index
    %8 = vector.load %arg4[%c0_7, %c0_8] : memref<32x1568xbf16, #tpu.memory_space<vmem>>, vector<32x1568xbf16>
    %cst_9 = arith.constant dense<0.000000e+00> : vector<2x1568xf32>
    %9 = tpu.matmul %7, %8, %cst_9 {dimension_numbers = #tpu.dot_dimension_numbers<[1], [0], [0], [1], [0, 0, 1, 1], [], []>} : vector<2x32xbf16>, vector<32x1568xbf16>, vector<2x1568xf32> -> vector<2x1568xf32>
    %c0_10 = arith.constant 0 : index
    %c0_11 = arith.constant 0 : index
    %10 = vector.load %arg5[%c0_10, %c0_11] : memref<1x1568xf32, #tpu.memory_space<vmem>>, vector<1x1568xf32>
    %11 = vector.broadcast %10 : vector<1x1568xf32> to vector<2x1568xf32>
    %12 = arith.addf %9, %11 : vector<2x1568xf32>
    %13 = arith.truncf %12 : vector<2x1568xf32> to vector<2x1568xbf16>
    %c0_12 = arith.constant 0 : index
    %c0_13 = arith.constant 0 : index
    %14 = vector.load %arg7[%c0_12, %c0_13] : memref<2x1568xbf16, #tpu.memory_space<vmem>>, vector<2x1568xbf16>
    tpu.vector_store %arg7[%c0_12, %c0_13], %13 {strides = array<i32>} : memref<2x1568xbf16, #tpu.memory_space<vmem>>, vector<2x1568xbf16>,
    return
  }
  func.func @transform_0(%arg0: i32) -> (i32, i32) {
    %c0_i32 = arith.constant 0 : i32
    %c0_i32_0 = arith.constant 0 : i32
    return %arg0, %c0_i32 : i32, i32
  }
  func.func @transform_1(%arg0: i32) -> (i32, i32) {
    %c0_i32 = arith.constant 0 : i32
    %c0_i32_0 = arith.constant 0 : i32
    %c0_i32_1 = arith.constant 0 : i32
    return %c0_i32, %c0_i32_0 : i32, i32
  }
  func.func @transform_2(%arg0: i32) -> (i32, i32) {
    %c0_i32 = arith.constant 0 : i32
    %c0_i32_0 = arith.constant 0 : i32
    %c0_i32_1 = arith.constant 0 : i32
    return %c0_i32, %c0_i32_0 : i32, i32
  }
  func.func @transform_3(%arg0: i32) -> (i32, i32) {
    %c0_i32 = arith.constant 0 : i32
    %c0_i32_0 = arith.constant 0 : i32
    %c0_i32_1 = arith.constant 0 : i32
    return %c0_i32, %c0_i32_0 : i32, i32
  }
  func.func @transform_4(%arg0: i32) -> (i32, i32) {
    %c0_i32 = arith.constant 0 : i32
    %c0_i32_0 = arith.constant 0 : i32
    %c0_i32_1 = arith.constant 0 : i32
    return %c0_i32, %c0_i32_0 : i32, i32
  }
  func.func @transform_5(%arg0: i32) -> (i32, i32) {
    %c0_i32 = arith.constant 0 : i32
    %c0_i32_0 = arith.constant 0 : i32
    return %arg0, %c0_i32 : i32, i32
  }
  func.func @transform_6(%arg0: i32) -> (i32, i32) {
    %c0_i32 = arith.constant 0 : i32
    %c0_i32_0 = arith.constant 0 : i32
    return %arg0, %c0_i32 : i32, i32
  }
}

module attributes {stable_mosaic.version = 11 : i64} {
  func.func @_gemm_bias_act_kernel(%arg0: i32, %arg1: memref<98x128xbf16, #tpu.memory_space<vmem>>, %arg2: memref<128x128xbf16, #tpu.memory_space<vmem>>, %arg3: memref<1x128xf32, #tpu.memory_space<vmem>>, %arg4: memref<98x128xbf16, #tpu.memory_space<vmem>>) attributes {dimension_semantics = [#tpu.dimension_semantics<parallel>], iteration_bounds = array<i64: 1>, scalar_prefetch = 0 : i64, scratch_operands = 0 : i64, tpu.core_type = #tpu.core_type<tc>, window_params = [{transform_indices = @transform_0, window_bounds = array<i64: 98, 128>}, {pipeline_mode = #tpu.pipeline_mode<synchronous>, transform_indices = @transform_1, window_bounds = array<i64: 128, 128>}, {pipeline_mode = #tpu.pipeline_mode<synchronous>, transform_indices = @transform_2, window_bounds = array<i64: 1, 128>}, {transform_indices = @transform_3, window_bounds = array<i64: 98, 128>}]} {
    %c0 = arith.constant 0 : index
    %c0_0 = arith.constant 0 : index
    %0 = vector.load %arg1[%c0, %c0_0] : memref<98x128xbf16, #tpu.memory_space<vmem>>, vector<98x128xbf16>
    %c0_1 = arith.constant 0 : index
    %c0_2 = arith.constant 0 : index
    %1 = vector.load %arg2[%c0_1, %c0_2] : memref<128x128xbf16, #tpu.memory_space<vmem>>, vector<128x128xbf16>
    %cst = arith.constant dense<0.000000e+00> : vector<98x128xf32>
    %2 = tpu.matmul %0, %1, %cst {dimension_numbers = #tpu.dot_dimension_numbers<[1], [0], [0], [1], [0, 0, 1, 1], [], []>} : vector<98x128xbf16>, vector<128x128xbf16>, vector<98x128xf32> -> vector<98x128xf32>
    %c0_3 = arith.constant 0 : index
    %c0_4 = arith.constant 0 : index
    %3 = vector.load %arg3[%c0_3, %c0_4] : memref<1x128xf32, #tpu.memory_space<vmem>>, vector<1x128xf32>
    %4 = vector.broadcast %3 : vector<1x128xf32> to vector<98x128xf32>
    %5 = arith.addf %2, %4 : vector<98x128xf32>
    %cst_5 = arith.constant 0.000000e+00 : f32
    %6 = vector.broadcast %cst_5 : f32 to vector<98x128xf32>
    %7 = arith.maximumf %5, %6 : vector<98x128xf32>
    %8 = arith.truncf %7 : vector<98x128xf32> to vector<98x128xbf16>
    %c0_6 = arith.constant 0 : index
    %c0_7 = arith.constant 0 : index
    %9 = vector.load %arg4[%c0_6, %c0_7] : memref<98x128xbf16, #tpu.memory_space<vmem>>, vector<98x128xbf16>
    tpu.vector_store %arg4[%c0_6, %c0_7], %8 {strides = array<i32>} : memref<98x128xbf16, #tpu.memory_space<vmem>>, vector<98x128xbf16>,
    return
  }
  func.func @transform_0(%arg0: i32) -> (i32, i32) {
    %c0_i32 = arith.constant 0 : i32
    %c0_i32_0 = arith.constant 0 : i32
    return %arg0, %c0_i32 : i32, i32
  }
  func.func @transform_1(%arg0: i32) -> (i32, i32) {
    %c0_i32 = arith.constant 0 : i32
    %c0_i32_0 = arith.constant 0 : i32
    %c0_i32_1 = arith.constant 0 : i32
    return %c0_i32, %c0_i32_0 : i32, i32
  }
  func.func @transform_2(%arg0: i32) -> (i32, i32) {
    %c0_i32 = arith.constant 0 : i32
    %c0_i32_0 = arith.constant 0 : i32
    %c0_i32_1 = arith.constant 0 : i32
    return %c0_i32, %c0_i32_0 : i32, i32
  }
  func.func @transform_3(%arg0: i32) -> (i32, i32) {
    %c0_i32 = arith.constant 0 : i32
    %c0_i32_0 = arith.constant 0 : i32
    return %arg0, %c0_i32 : i32, i32
  }
}

module attributes {stable_mosaic.version = 11 : i64} {
  func.func @_gemm_bias_act_kernel(%arg0: i32, %arg1: memref<392x64xbf16, #tpu.memory_space<vmem>>, %arg2: memref<64x128xbf16, #tpu.memory_space<vmem>>, %arg3: memref<1x128xf32, #tpu.memory_space<vmem>>, %arg4: memref<392x128xf32, #tpu.memory_space<vmem>>) attributes {dimension_semantics = [#tpu.dimension_semantics<parallel>], iteration_bounds = array<i64: 1>, scalar_prefetch = 0 : i64, scratch_operands = 0 : i64, tpu.core_type = #tpu.core_type<tc>, window_params = [{transform_indices = @transform_0, window_bounds = array<i64: 392, 64>}, {pipeline_mode = #tpu.pipeline_mode<synchronous>, transform_indices = @transform_1, window_bounds = array<i64: 64, 128>}, {pipeline_mode = #tpu.pipeline_mode<synchronous>, transform_indices = @transform_2, window_bounds = array<i64: 1, 128>}, {transform_indices = @transform_3, window_bounds = array<i64: 392, 128>}]} {
    %c0 = arith.constant 0 : index
    %c0_0 = arith.constant 0 : index
    %0 = vector.load %arg1[%c0, %c0_0] : memref<392x64xbf16, #tpu.memory_space<vmem>>, vector<392x64xbf16>
    %c0_1 = arith.constant 0 : index
    %c0_2 = arith.constant 0 : index
    %1 = vector.load %arg2[%c0_1, %c0_2] : memref<64x128xbf16, #tpu.memory_space<vmem>>, vector<64x128xbf16>
    %cst = arith.constant dense<0.000000e+00> : vector<392x128xf32>
    %2 = tpu.matmul %0, %1, %cst {dimension_numbers = #tpu.dot_dimension_numbers<[1], [0], [0], [1], [0, 0, 1, 1], [], []>} : vector<392x64xbf16>, vector<64x128xbf16>, vector<392x128xf32> -> vector<392x128xf32>
    %c0_3 = arith.constant 0 : index
    %c0_4 = arith.constant 0 : index
    %3 = vector.load %arg3[%c0_3, %c0_4] : memref<1x128xf32, #tpu.memory_space<vmem>>, vector<1x128xf32>
    %4 = vector.broadcast %3 : vector<1x128xf32> to vector<392x128xf32>
    %5 = arith.addf %2, %4 : vector<392x128xf32>
    %cst_5 = arith.constant 0.000000e+00 : f32
    %6 = vector.broadcast %cst_5 : f32 to vector<392x128xf32>
    %7 = arith.subf %6, %5 : vector<392x128xf32>
    %8 = math.exp %7 : vector<392x128xf32>
    %cst_6 = arith.constant 1.000000e+00 : f32
    %9 = vector.broadcast %cst_6 : f32 to vector<392x128xf32>
    %10 = arith.addf %9, %8 : vector<392x128xf32>
    %11 = tpu.reciprocal %10 {approx = true} : vector<392x128xf32> -> vector<392x128xf32>
    %c0_7 = arith.constant 0 : index
    %c0_8 = arith.constant 0 : index
    %12 = vector.load %arg4[%c0_7, %c0_8] : memref<392x128xf32, #tpu.memory_space<vmem>>, vector<392x128xf32>
    tpu.vector_store %arg4[%c0_7, %c0_8], %11 {strides = array<i32>} : memref<392x128xf32, #tpu.memory_space<vmem>>, vector<392x128xf32>,
    return
  }
  func.func @transform_0(%arg0: i32) -> (i32, i32) {
    %c0_i32 = arith.constant 0 : i32
    %c0_i32_0 = arith.constant 0 : i32
    return %arg0, %c0_i32 : i32, i32
  }
  func.func @transform_1(%arg0: i32) -> (i32, i32) {
    %c0_i32 = arith.constant 0 : i32
    %c0_i32_0 = arith.constant 0 : i32
    %c0_i32_1 = arith.constant 0 : i32
    return %c0_i32, %c0_i32_0 : i32, i32
  }
  func.func @transform_2(%arg0: i32) -> (i32, i32) {
    %c0_i32 = arith.constant 0 : i32
    %c0_i32_0 = arith.constant 0 : i32
    %c0_i32_1 = arith.constant 0 : i32
    return %c0_i32, %c0_i32_0 : i32, i32
  }
  func.func @transform_3(%arg0: i32) -> (i32, i32) {
    %c0_i32 = arith.constant 0 : i32
    %c0_i32_0 = arith.constant 0 : i32
    return %arg0, %c0_i32 : i32, i32
  }
}

</mosaic_0001>

<bundles_post_ra>
// kernel: sparse_conv_autoencoder_forward.5
= control target key start
LH: loop header
LB: loop body
LE: loop exit
PB: predicated region body
PF: predicated region fallthrough
CT: control target
= control target key end

     0   :  { %vm199_vm0 = vcmask 130048   ;;  %s1108_s1 = inlined_call_operand.vmem [shape: bf16[16,128], index: 1, kind: input, shape index: {}]   ;;  %s1109_s0 = inlined_call_operand.vmem [shape: bf16[392,16], index: 0, kind: input, shape index: {}]   ;;  %s1110_s2 = inlined_call_operand.vmem [shape: f32[1,128], index: 2, kind: input, shape index: {}]   ;;  %s1111_s3 = inlined_call_operand.vmem [shape: bf16[392,128], index: 3, kind: output, shape index: {}]  }
   0x1   :  { %v708_v0 = vld [vmem:[%s1108_s1] sm:$0xff]  ;;  %v691_v2 = vld [vmem:[%s1109_s0 + $0x38] sm:$0xff]  ;;  %v698_v3 = vld [vmem:[%s1109_s0 + $0x70] sm:$0xff] }
   0x2   :  { %v684_v1 = vld [vmem:[%s1109_s0] sm:$0xff]  ;;  %282 = vmatpush.bf16.msra.mxu0 %v708_v0  ;;  %852 = vmatpush.bf16.msra.mxu1 %v708_v0  ;;  %v705_v4 = vld [vmem:[%s1109_s0 + $0xa8] sm:$0xff]  ;;  %v699_v7 = vld [vmem:[%s1109_s0 + $0x78] sm:$0xff] }
   0x3   :  { %853 = vmatpush.bf16.msra.mxu2 %v708_v0  ;;  %854 = vmatpush.bf16.msra.mxu3 %v708_v0  ;;  %v685_v5 = vld [vmem:[%s1109_s0 + $0x8] sm:$0xff]  ;;  %v692_v6 = vld [vmem:[%s1109_s0 + $0x40] sm:$0xff]  ;;  %v706_v8 = vld [vmem:[%s1109_s0 + $0xb0] sm:$0xff] }
   0x4   :  { %v686_v9 = vld [vmem:[%s1109_s0 + $0x10] sm:$0xff]  ;;  %v693_v10 = vld [vmem:[%s1109_s0 + $0x48] sm:$0xff]  ;;  %v700_v11 = vld [vmem:[%s1109_s0 + $0x80] sm:$0xff] }
   0x5   :  { %659 = vmatmul.msk.bf16.vlgmr.msra.gmra.mxu0 %vm199_vm0, %v684_v1  ;;  %666 = vmatmul.msk.bf16.vlgmr.msra.gmra.mxu1 %vm199_vm0, %v691_v2  ;;  %v707_v12 = vld [vmem:[%s1109_s0 + $0xb8] sm:$0xff]  ;;  %v694_v14 = vld [vmem:[%s1109_s0 + $0x50] sm:$0xff]  ;;  %v701_v15 = vld [vmem:[%s1109_s0 + $0x88] sm:$0xff] }
   0x6   :  { %673 = vmatmul.msk.bf16.vlgmr.msra.gmra.mxu2 %vm199_vm0, %v698_v3  ;;  %680 = vmatmul.msk.bf16.vlgmr.msra.gmra.mxu3 %vm199_vm0, %v705_v4  ;;  %v687_v13 = vld [vmem:[%s1109_s0 + $0x18] sm:$0xff]  ;;  %v63_v16 = vld [vmem:[%s1109_s0 + $0xc0] sm:$0xf]  ;;  %v702_v21 = vld [vmem:[%s1109_s0 + $0x90] sm:$0xff] }
   0x7   :  { %v167_v17 = vunpack.c.l.b16 %v63_v16  ;;  %v688_v19 = vld [vmem:[%s1109_s0 + $0x20] sm:$0xff]  ;;  %v695_v20 = vld [vmem:[%s1109_s0 + $0x58] sm:$0xff]  ;;  %v689_v22 = vld [vmem:[%s1109_s0 + $0x28] sm:$0xff] }
   0x8   :  { %v696_v23 = vld [vmem:[%s1109_s0 + $0x60] sm:$0xff]  ;;  %v703_v24 = vld [vmem:[%s1109_s0 + $0x98] sm:$0xff]  ;;  %v690_v25 = vld [vmem:[%s1109_s0 + $0x30] sm:$0xff] }
   0x9   :  { %v192_v18 = vpack.c.b16 %v167_v17, %v167_v17  ;;  %v697_v26 = vld [vmem:[%s1109_s0 + $0x68] sm:$0xff]  ;;  %v704_v27 = vld [vmem:[%s1109_s0 + $0xa0] sm:$0xff] }
   0xa   :  { %v982_v30 = vld [vmem:[%s1110_s2] ss:$0 sm:$0xff] }
  0x15   :  { %660 = vmatmul.msk.bf16.gmra.mxu0 %vm199_vm0, %v685_v5  ;;  %667 = vmatmul.msk.bf16.gmra.mxu1 %vm199_vm0, %v692_v6 }
  0x16   :  { %674 = vmatmul.msk.bf16.gmra.mxu2 %vm199_vm0, %v699_v7  ;;  %681 = vmatmul.msk.bf16.gmra.mxu3 %vm199_vm0, %v706_v8 }
  0x25   :  { %661 = vmatmul.msk.bf16.gmra.mxu0 %vm199_vm0, %v686_v9  ;;  %668 = vmatmul.msk.bf16.gmra.mxu1 %vm199_vm0, %v693_v10 }
  0x26   :  { %675 = vmatmul.msk.bf16.gmra.mxu2 %vm199_vm0, %v700_v11  ;;  %682 = vmatmul.msk.bf16.gmra.mxu3 %vm199_vm0, %v707_v12 }
  0x35   :  { %662 = vmatmul.msk.bf16.gmra.mxu0 %vm199_vm0, %v687_v13  ;;  %669 = vmatmul.msk.bf16.gmra.mxu1 %vm199_vm0, %v694_v14 }
  0x36   :  { %676 = vmatmul.msk.bf16.gmra.mxu2 %vm199_vm0, %v701_v15  ;;  %683 = vmatmul.msk.bf16.gmra.mxu3 %vm199_vm0, %v192_v18 }
  0x45   :  { %663 = vmatmul.msk.bf16.gmra.mxu0 %vm199_vm0, %v688_v19  ;;  %670 = vmatmul.msk.bf16.gmra.mxu1 %vm199_vm0, %v695_v20 }
  0x46   :  { %677 = vmatmul.msk.bf16.gmra.mxu2 %vm199_vm0, %v702_v21 }
  0x55   :  { %664 = vmatmul.msk.bf16.gmra.mxu0 %vm199_vm0, %v689_v22  ;;  %671 = vmatmul.msk.bf16.gmra.mxu1 %vm199_vm0, %v696_v23 }
  0x56   :  { %678 = vmatmul.msk.bf16.gmra.mxu2 %vm199_vm0, %v703_v24 }
  0x65   :  { %665 = vmatmul.msk.bf16.gmra.mxu0 %vm199_vm0, %v690_v25  ;;  %672 = vmatmul.msk.bf16.gmra.mxu1 %vm199_vm0, %v697_v26 }
  0x66   :  { %679 = vmatmul.msk.bf16.gmra.mxu2 %vm199_vm0, %v704_v27 }
  0x82   :  { %v284_v28 = vpop.f32.mrf.mxu0  ;;  %v319_v29 = vpop.f32.mrf.mxu1 }
  0x83   :  { %v285_v31 = vadd.f32 %v982_v30, %v284_v28  ;;  %v320_v32 = vadd.f32 %v982_v30, %v319_v29 }
  0x85   :  { %v408_v38 = vmax.f32 %v285_v31, 0.0  ;;  %v422_v39 = vmax.f32 %v320_v32, 0.0 }
  0x89   :  { %v354_v33 = vpop.f32.mrf.mxu2  ;;  %v389_v53 = vpop.f32.mrf.mxu3 }
  0x8a   :  { %v286_v34 = vpop.f32.mrf.mxu0  ;;  %v321_v35 = vpop.f32.mrf.mxu1  ;;  %v355_v44 = vadd.f32 %v982_v30, %v354_v33  ;;  %v390_v0 = vadd.f32 %v982_v30, %v389_v53 }
  0x8b   :  { %v287_v36 = vadd.f32 %v982_v30, %v286_v34  ;;  %v322_v37 = vadd.f32 %v982_v30, %v321_v35 }
  0x8c   :  { %v436_v49 = vmax.f32 %v355_v44, 0.0  ;;  %v450_v6 = vmax.f32 %v390_v0, 0.0 }
  0x8d   :  { %v409_v40 = vmax.f32 %v287_v36, 0.0  ;;  %v423_v41 = vmax.f32 %v322_v37, 0.0 }
  0x8f   :  { %v712_v42 = vpack.c.bf16 %v409_v40, %v408_v38  ;;  %v747_v43 = vpack.c.bf16 %v423_v41, %v422_v39 }
  0x91   :  { %713 = vst [vmem:[%s1111_s3] sm:$0xff] %v712_v42   ;;  %v356_v45 = vpop.f32.mrf.mxu2  ;;  %v391_v4 = vpop.f32.mrf.mxu3 }
  0x92   :  { %835 = vst [vmem:[%s1111_s3 + $0x38] sm:$0xff] %v747_v43   ;;  %v357_v46 = vadd.f32 %v982_v30, %v356_v45  ;;  %v289_v47 = vpop.f32.mrf.mxu0  ;;  %v324_v48 = vpop.f32.mrf.mxu1  ;;  %v392_v7 = vadd.f32 %v982_v30, %v391_v4 }
  0x93   :  { %v290_v52 = vadd.f32 %v982_v30, %v289_v47  ;;  %v325_v54 = vadd.f32 %v982_v30, %v324_v48 }
  0x94   :  { %v437_v50 = vmax.f32 %v357_v46, 0.0  ;;  %v451_v11 = vmax.f32 %v392_v7, 0.0 }
  0x95   :  { %v410_v60 = vmax.f32 %v290_v52, 0.0  ;;  %v424_v61 = vmax.f32 %v325_v54, 0.0 }
  0x96   :  { %v782_v51 = vpack.c.bf16 %v437_v50, %v436_v49  ;;  %v817_v14 = vpack.c.bf16 %v451_v11, %v450_v6 }
  0x98   :  { %842 = vst [vmem:[%s1111_s3 + $0x70] sm:$0xff] %v782_v51  }
  0x99   :  { %v359_v55 = vpop.f32.mrf.mxu2  ;;  %849 = vst [vmem:[%s1111_s3 + $0xa8] sm:$0xff] %v817_v14   ;;  %v394_v17 = vpop.f32.mrf.mxu3 }
  0x9a   :  { %v291_v56 = vpop.f32.mrf.mxu0  ;;  %v326_v57 = vpop.f32.mrf.mxu1  ;;  %v360_v3 = vadd.f32 %v982_v30, %v359_v55  ;;  %v395_v28 = vadd.f32 %v982_v30, %v394_v17 }
  0x9b   :  { %v292_v58 = vadd.f32 %v982_v30, %v291_v56  ;;  %v327_v59 = vadd.f32 %v982_v30, %v326_v57 }
  0x9c   :  { %v438_v12 = vmax.f32 %v360_v3, 0.0  ;;  %v452_v35 = vmax.f32 %v395_v28, 0.0 }
  0x9d   :  { %v411_v62 = vmax.f32 %v292_v58, 0.0  ;;  %v425_v63 = vmax.f32 %v327_v59, 0.0 }
  0x9f   :  { %v717_v1 = vpack.c.bf16 %v411_v62, %v410_v60  ;;  %v752_v2 = vpack.c.bf16 %v425_v63, %v424_v61 }
  0xa1   :  { %829 = vst [vmem:[%s1111_s3 + $0x8] sm:$0xff] %v717_v1   ;;  %v361_v5 = vpop.f32.mrf.mxu2  ;;  %v396_v33 = vpop.f32.mrf.mxu3 }
  0xa2   :  { %836 = vst [vmem:[%s1111_s3 + $0x40] sm:$0xff] %v752_v2   ;;  %v362_v8 = vadd.f32 %v982_v30, %v361_v5  ;;  %v294_v9 = vpop.f32.mrf.mxu0  ;;  %v329_v10 = vpop.f32.mrf.mxu1  ;;  %v397_v36 = vadd.f32 %v982_v30, %v396_v33 }
  0xa3   :  { %v295_v16 = vadd.f32 %v982_v30, %v294_v9  ;;  %v330_v18 = vadd.f32 %v982_v30, %v329_v10 }
  0xa4   :  { %v439_v13 = vmax.f32 %v362_v8, 0.0  ;;  %v453_v40 = vmax.f32 %v397_v36, 0.0 }
  0xa5   :  { %v412_v24 = vmax.f32 %v295_v16, 0.0  ;;  %v426_v25 = vmax.f32 %v330_v18, 0.0 }
  0xa6   :  { %v787_v15 = vpack.c.bf16 %v439_v13, %v438_v12  ;;  %v822_v43 = vpack.c.bf16 %v453_v40, %v452_v35 }
  0xa8   :  { %843 = vst [vmem:[%s1111_s3 + $0x78] sm:$0xff] %v787_v15  }
  0xa9   :  { %v364_v19 = vpop.f32.mrf.mxu2  ;;  %850 = vst [vmem:[%s1111_s3 + $0xb0] sm:$0xff] %v822_v43   ;;  %v399_v46 = vpop.f32.mrf.mxu3 }
  0xaa   :  { %v296_v20 = vpop.f32.mrf.mxu0  ;;  %v331_v21 = vpop.f32.mrf.mxu1  ;;  %v365_v32 = vadd.f32 %v982_v30, %v364_v19  ;;  %v400_v57 = vadd.f32 %v982_v30, %v399_v46 }
  0xab   :  { %v297_v22 = vadd.f32 %v982_v30, %v296_v20  ;;  %v332_v23 = vadd.f32 %v982_v30, %v331_v21 }
  0xac   :  { %v440_v41 = vmax.f32 %v365_v32, 0.0  ;;  %v454_v63 = vmax.f32 %v400_v57, 0.0 }
  0xad   :  { %v413_v26 = vmax.f32 %v297_v22, 0.0  ;;  %v427_v27 = vmax.f32 %v332_v23, 0.0 }
  0xaf   :  { %v722_v29 = vpack.c.bf16 %v413_v26, %v412_v24  ;;  %v757_v31 = vpack.c.bf16 %v427_v27, %v426_v25 }
  0xb1   :  { %830 = vst [vmem:[%s1111_s3 + $0x10] sm:$0xff] %v722_v29   ;;  %v366_v34 = vpop.f32.mrf.mxu2  ;;  %v401_v61 = vpop.f32.mrf.mxu3 }
  0xb2   :  { %837 = vst [vmem:[%s1111_s3 + $0x48] sm:$0xff] %v757_v31   ;;  %v367_v37 = vadd.f32 %v982_v30, %v366_v34  ;;  %v299_v38 = vpop.f32.mrf.mxu0  ;;  %v334_v39 = vpop.f32.mrf.mxu1  ;;  %v402_v0 = vadd.f32 %v982_v30, %v401_v61 }
  0xb3   :  { %v300_v45 = vadd.f32 %v982_v30, %v299_v38  ;;  %v335_v47 = vadd.f32 %v982_v30, %v334_v39 }
  0xb4   :  { %v441_v42 = vmax.f32 %v367_v37, 0.0  ;;  %v455_v4 = vmax.f32 %v402_v0, 0.0 }
  0xb5   :  { %v414_v53 = vmax.f32 %v300_v45, 0.0  ;;  %v428_v54 = vmax.f32 %v335_v47, 0.0 }
  0xb6   :  { %v792_v44 = vpack.c.bf16 %v441_v42, %v440_v41  ;;  %v827_v7 = vpack.c.bf16 %v455_v4, %v454_v63 }
  0xb8   :  { %844 = vst [vmem:[%s1111_s3 + $0x80] sm:$0xff] %v792_v44  }
  0xb9   :  { %v369_v48 = vpop.f32.mrf.mxu2  ;;  %851 = vst [vmem:[%s1111_s3 + $0xb8] sm:$0xff] %v827_v7   ;;  %v404_v10 = vpop.f32.mrf.mxu3 }
  0xba   :  { %v301_v49 = vpop.f32.mrf.mxu0  ;;  %v336_v50 = vpop.f32.mrf.mxu1  ;;  %v370_v60 = vadd.f32 %v982_v30, %v369_v48  ;;  %v405_v13 = vadd.f32 %v982_v30, %v404_v10 }
  0xbb   :  { %v302_v51 = vadd.f32 %v982_v30, %v301_v49  ;;  %v337_v52 = vadd.f32 %v982_v30, %v336_v50 }
  0xbc   :  { %v442_v5 = vmax.f32 %v370_v60, 0.0  ;;  %v456_v18 = vmax.f32 %v405_v13, 0.0 }
  0xbd   :  { %v415_v55 = vmax.f32 %v302_v51, 0.0  ;;  %v429_v56 = vmax.f32 %v337_v52, 0.0 }
  0xbe   :  { %v505_v23 = vpack.c.bf16 %v456_v18, %v456_v18 }
  0xbf   :  { %v727_v58 = vpack.c.bf16 %v415_v55, %v414_v53  ;;  %v762_v59 = vpack.c.bf16 %v429_v56, %v428_v54 }
  0xc0   :  { %554 = vst [vmem:[%s1111_s3 + $0xc0] sm:$0xf] %v505_v23 }
  0xc1   :  { %831 = vst [vmem:[%s1111_s3 + $0x18] sm:$0xff] %v727_v58   ;;  %v371_v62 = vpop.f32.mrf.mxu2  ;;  %v406_v27 = vpop.f32.mrf.mxu3 }
  0xc2   :  { %838 = vst [vmem:[%s1111_s3 + $0x50] sm:$0xff] %v762_v59   ;;  %v372_v1 = vadd.f32 %v982_v30, %v371_v62  ;;  %v304_v2 = vpop.f32.mrf.mxu0  ;;  %v339_v3 = vpop.f32.mrf.mxu1 }
  0xc3   :  { %v305_v9 = vadd.f32 %v982_v30, %v304_v2  ;;  %v340_v11 = vadd.f32 %v982_v30, %v339_v3 }
  0xc4   :  { %v443_v6 = vmax.f32 %v372_v1, 0.0 }
  0xc5   :  { %v416_v19 = vmax.f32 %v305_v9, 0.0  ;;  %v430_v20 = vmax.f32 %v340_v11, 0.0 }
  0xc6   :  { %v797_v8 = vpack.c.bf16 %v443_v6, %v442_v5 }
  0xc8   :  { %845 = vst [vmem:[%s1111_s3 + $0x88] sm:$0xff] %v797_v8  }
  0xc9   :  { %v374_v12 = vpop.f32.mrf.mxu2 }
  0xca   :  { %v306_v14 = vpop.f32.mrf.mxu0  ;;  %v341_v15 = vpop.f32.mrf.mxu1  ;;  %v375_v26 = vadd.f32 %v982_v30, %v374_v12 }
  0xcb   :  { %v307_v16 = vadd.f32 %v982_v30, %v306_v14  ;;  %v342_v17 = vadd.f32 %v982_v30, %v341_v15 }
  0xcc   :  { %v444_v33 = vmax.f32 %v375_v26, 0.0 }
  0xcd   :  { %v417_v21 = vmax.f32 %v307_v16, 0.0  ;;  %v431_v22 = vmax.f32 %v342_v17, 0.0 }
  0xcf   :  { %v732_v24 = vpack.c.bf16 %v417_v21, %v416_v19  ;;  %v767_v25 = vpack.c.bf16 %v431_v22, %v430_v20 }
  0xd1   :  { %832 = vst [vmem:[%s1111_s3 + $0x20] sm:$0xff] %v732_v24   ;;  %v376_v28 = vpop.f32.mrf.mxu2 }
  0xd2   :  { %839 = vst [vmem:[%s1111_s3 + $0x58] sm:$0xff] %v767_v25   ;;  %v377_v29 = vadd.f32 %v982_v30, %v376_v28  ;;  %v309_v31 = vpop.f32.mrf.mxu0  ;;  %v344_v32 = vpop.f32.mrf.mxu1 }
  0xd3   :  { %v310_v36 = vadd.f32 %v982_v30, %v309_v31  ;;  %v345_v37 = vadd.f32 %v982_v30, %v344_v32 }
  0xd4   :  { %v445_v34 = vmax.f32 %v377_v29, 0.0 }
  0xd5   :  { %v418_v43 = vmax.f32 %v310_v36, 0.0  ;;  %v432_v44 = vmax.f32 %v345_v37, 0.0 }
  0xd6   :  { %v802_v35 = vpack.c.bf16 %v445_v34, %v444_v33 }
  0xd8   :  { %846 = vst [vmem:[%s1111_s3 + $0x90] sm:$0xff] %v802_v35  }
  0xd9   :  { %v379_v38 = vpop.f32.mrf.mxu2 }
  0xda   :  { %v311_v39 = vpop.f32.mrf.mxu0  ;;  %v346_v40 = vpop.f32.mrf.mxu1  ;;  %v380_v49 = vadd.f32 %v982_v30, %v379_v38 }
  0xdb   :  { %v312_v41 = vadd.f32 %v982_v30, %v311_v39  ;;  %v347_v42 = vadd.f32 %v982_v30, %v346_v40 }
  0xdc   :  { %v446_v54 = vmax.f32 %v380_v49, 0.0 }
  0xdd   :  { %v419_v45 = vmax.f32 %v312_v41, 0.0  ;;  %v433_v46 = vmax.f32 %v347_v42, 0.0 }
  0xdf   :  { %v737_v47 = vpack.c.bf16 %v419_v45, %v418_v43  ;;  %v772_v48 = vpack.c.bf16 %v433_v46, %v432_v44 }
  0xe1   :  { %833 = vst [vmem:[%s1111_s3 + $0x28] sm:$0xff] %v737_v47   ;;  %v381_v50 = vpop.f32.mrf.mxu2 }
  0xe2   :  { %840 = vst [vmem:[%s1111_s3 + $0x60] sm:$0xff] %v772_v48   ;;  %v382_v51 = vadd.f32 %v982_v30, %v381_v50  ;;  %v314_v52 = vpop.f32.mrf.mxu0  ;;  %v349_v53 = vpop.f32.mrf.mxu1 }
  0xe3   :  { %v315_v57 = vadd.f32 %v982_v30, %v314_v52  ;;  %v350_v58 = vadd.f32 %v982_v30, %v349_v53 }
  0xe4   :  { %v447_v55 = vmax.f32 %v382_v51, 0.0 }
  0xe5   :  { %v420_v0 = vmax.f32 %v315_v57, 0.0  ;;  %v434_v1 = vmax.f32 %v350_v58, 0.0 }
  0xe6   :  { %v807_v56 = vpack.c.bf16 %v447_v55, %v446_v54 }
  0xe8   :  { %847 = vst [vmem:[%s1111_s3 + $0x98] sm:$0xff] %v807_v56  }
  0xe9   :  { %v384_v59 = vpop.f32.mrf.mxu2 }
  0xea   :  { %v316_v60 = vpop.f32.mrf.mxu0  ;;  %v351_v61 = vpop.f32.mrf.mxu1  ;;  %v385_v6 = vadd.f32 %v982_v30, %v384_v59 }
  0xeb   :  { %v317_v62 = vadd.f32 %v982_v30, %v316_v60  ;;  %v352_v63 = vadd.f32 %v982_v30, %v351_v61 }
  0xec   :  { %v448_v9 = vmax.f32 %v385_v6, 0.0 }
  0xed   :  { %v421_v2 = vmax.f32 %v317_v62, 0.0  ;;  %v435_v3 = vmax.f32 %v352_v63, 0.0 }
  0xef   :  { %v742_v4 = vpack.c.bf16 %v421_v2, %v420_v0  ;;  %v777_v5 = vpack.c.bf16 %v435_v3, %v434_v1 }
  0xf1   :  { %834 = vst [vmem:[%s1111_s3 + $0x30] sm:$0xff] %v742_v4   ;;  %v386_v7 = vpop.f32.mrf.mxu2 }
  0xf2   :  { %841 = vst [vmem:[%s1111_s3 + $0x68] sm:$0xff] %v777_v5   ;;  %v387_v8 = vadd.f32 %v982_v30, %v386_v7 }
  0xf4   :  { %v449_v10 = vmax.f32 %v387_v8, 0.0 }
  0xf6   :  { %v812_v11 = vpack.c.bf16 %v449_v10, %v448_v9 }
  0xf8   :  { %848 = vst [vmem:[%s1111_s3 + $0xa0] sm:$0xff] %v812_v11  }

// kernel: sparse_conv_autoencoder_forward.6
= control target key start
LH: loop header
LB: loop body
LE: loop exit
PB: predicated region body
PF: predicated region fallthrough
CT: control target
= control target key end

     0   :  { %vm164_vm0 = vcmask 130048   ;;  %s640_s1 = inlined_call_operand.vmem [shape: bf16[144,128], index: 1, kind: input, shape index: {}]   ;;  %s641_s0 = inlined_call_operand.vmem [shape: bf16[98,144], index: 0, kind: input, shape index: {}]   ;;  %s642_s2 = inlined_call_operand.vmem [shape: f32[1,128], index: 2, kind: input, shape index: {}]   ;;  %s643_s3 = inlined_call_operand.vmem [shape: bf16[98,128], index: 3, kind: output, shape index: {}]  }
   0x1   :  { %v425_v0 = vld [vmem:[%s640_s1 + $0x38] sm:$0xff]  ;;  %v426_v1 = vld [vmem:[%s640_s1 + $0x40] sm:$0xff]  ;;  %v319_v3 = vld [vmem:[%s641_s0 + $0x8] sm:$0xf0] }
   0x2   :  { %v406_v2 = vld [vmem:[%s641_s0 + $0x4] sm:$0xf]  ;;  %186 = vmatpush.bf16.msra.mxu0 %v425_v0  ;;  %462 = vmatpush.bf16.msra.mxu2 %v425_v0  ;;  %v424_v5 = vld [vmem:[%s640_s1 + $0x30] sm:$0xff]  ;;  %v423_v6 = vld [vmem:[%s640_s1 + $0x28] sm:$0xff] }
   0x3   :  { %v322_v4 = vor.u32 %v406_v2, %v319_v3  ;;  %236 = vmatpush.bf16.msra.mxu1 %v426_v1  ;;  %470 = vmatpush.bf16.msra.mxu3 %v426_v1  ;;  %v422_v7 = vld [vmem:[%s640_s1 + $0x20] sm:$0xff]  ;;  %v421_v8 = vld [vmem:[%s640_s1 + $0x18] sm:$0xff]  ;;  %v408_v9 = vld [vmem:[%s641_s0 + $0x14] sm:$0xf] }
   0x4   :  { %v327_v10 = vld [vmem:[%s641_s0 + $0x18] sm:$0xf0]  ;;  %v420_v12 = vld [vmem:[%s640_s1 + $0x10] sm:$0xff]  ;;  %v419_v13 = vld [vmem:[%s640_s1 + $0x8] sm:$0xff] }
   0x5   :  { %v330_v11 = vor.u32 %v408_v9, %v327_v10  ;;  %v416_v14 = vld [vmem:[%s641_s0 + $0x54] sm:$0xf]  ;;  %v359_v15 = vld [vmem:[%s641_s0 + $0x58] sm:$0xf0]  ;;  %v418_v17 = vld [vmem:[%s640_s1] sm:$0xff] }
   0x6   :  { %399 = vmatmul.msk.bf16.vlgmr.msra.gmra.mxu1 %vm164_vm0, %v322_v4  ;;  %187 = vmatpush.bf16.msra.mxu0 %v424_v5  ;;  %v362_v16 = vor.u32 %v416_v14, %v359_v15  ;;  %v317_v18 = vld [vmem:[%s641_s0] sm:$0xf]  ;;  %v407_v19 = vld [vmem:[%s641_s0 + $0x4] sm:$0xf0]  ;;  %v341_v20 = vld [vmem:[%s641_s0 + $0x30] sm:$0xf] }
   0x7   :  { %463 = vmatpush.bf16.msra.mxu2 %v424_v5  ;;  %v413_v21 = vld [vmem:[%s641_s0 + $0x34] sm:$0xf0]  ;;  %v318_v22 = vor.u32 %v407_v19, %v317_v18  ;;  %v410_v24 = vld [vmem:[%s641_s0 + $0x24] sm:$0xf]  ;;  %v335_v25 = vld [vmem:[%s641_s0 + $0x28] sm:$0xf0] }
   0x8   :  { %404 = vmatmul.msk.bf16.vlgmr.msra.gmra.mxu3 %vm164_vm0, %v362_v16  ;;  %v342_v23 = vor.u32 %v413_v21, %v341_v20  ;;  %v338_v26 = vor.u32 %v410_v24, %v335_v25  ;;  %v27_v27 = vld [vmem:[%s641_s0 + $0x60] sm:$0x11]  ;;  %v325_v30 = vld [vmem:[%s641_s0 + $0x10] sm:$0xf]  ;;  %v409_v31 = vld [vmem:[%s641_s0 + $0x14] sm:$0xf0] }
   0x9   :  { %v88_v28 = vunpack.c.h.b16 %v27_v27  ;;  %v349_v32 = vld [vmem:[%s641_s0 + $0x40] sm:$0xf]  ;;  %v415_v33 = vld [vmem:[%s641_s0 + $0x44] sm:$0xf0]  ;;  %v326_v34 = vor.u32 %v409_v31, %v325_v30  ;;  %v412_v36 = vld [vmem:[%s641_s0 + $0x34] sm:$0xf]  ;;  %v87_v48 = vunpack.c.l.b16 %v27_v27 }
   0xa   :  { %188 = vmatpush.bf16.msra.mxu0 %v423_v6  ;;  %v350_v35 = vor.u32 %v415_v33, %v349_v32  ;;  %v343_v37 = vld [vmem:[%s641_s0 + $0x38] sm:$0xf0]  ;;  %v333_v39 = vld [vmem:[%s641_s0 + $0x20] sm:$0xf]  ;;  %v411_v40 = vld [vmem:[%s641_s0 + $0x24] sm:$0xf0] }
   0xb   :  { %464 = vmatpush.bf16.msra.mxu2 %v423_v6  ;;  %v102_v29 = vpack.c.b16 %v88_v28, %v88_v28  ;;  %v346_v38 = vor.u32 %v412_v36, %v343_v37  ;;  %v357_v41 = vld [vmem:[%s641_s0 + $0x50] sm:$0xf]  ;;  %v417_v42 = vld [vmem:[%s641_s0 + $0x54] sm:$0xf0]  ;;  %v334_v43 = vor.u32 %v411_v40, %v333_v39  ;;  %v414_v45 = vld [vmem:[%s641_s0 + $0x44] sm:$0xf]  ;;  %v101_v49 = vpack.c.b16 %v87_v48, %v87_v48 }
   0xc   :  { %v358_v44 = vor.u32 %v417_v42, %v357_v41  ;;  %v351_v46 = vld [vmem:[%s641_s0 + $0x48] sm:$0xf0]  ;;  %v604_v56 = vld [vmem:[%s642_s2] ss:$0 sm:$0xff] }
   0xd   :  { %v354_v47 = vor.u32 %v414_v45, %v351_v46 }
   0xe   :  { %189 = vmatpush.bf16.msra.mxu0 %v422_v7 }
   0xf   :  { %465 = vmatpush.bf16.msra.mxu2 %v422_v7 }
  0x12   :  { %190 = vmatpush.bf16.msra.mxu0 %v421_v8 }
  0x13   :  { %466 = vmatpush.bf16.msra.mxu2 %v421_v8 }
  0x16   :  { %400 = vmatmul.msk.bf16.gmra.mxu1 %vm164_vm0, %v330_v11  ;;  %191 = vmatpush.bf16.msra.mxu0 %v420_v12 }
  0x17   :  { %467 = vmatpush.bf16.msra.mxu2 %v420_v12 }
  0x18   :  { %405 = vmatmul.msk.bf16.gmra.mxu3 %vm164_vm0, %v102_v29 }
  0x1a   :  { %192 = vmatpush.bf16.msra.mxu0 %v419_v13 }
  0x1b   :  { %468 = vmatpush.bf16.msra.mxu2 %v419_v13 }
  0x1e   :  { %193 = vmatpush.bf16.msra.mxu0 %v418_v17 }
  0x1f   :  { %469 = vmatpush.bf16.msra.mxu2 %v418_v17 }
  0x21   :  { %194 = vmatmul.bf16.vlgmr.msra.gmra.mxu0 %v318_v22 }
  0x22   :  { %209 = vmatmul.bf16.vlgmr.msra.gmra.mxu2 %v342_v23 }
  0x26   :  { %401 = vmatmul.msk.bf16.gmra.mxu1 %vm164_vm0, %v338_v26 }
  0x31   :  { %199 = vmatmul.bf16.gmra.mxu0 %v326_v34 }
  0x32   :  { %214 = vmatmul.bf16.gmra.mxu2 %v350_v35 }
  0x36   :  { %402 = vmatmul.msk.bf16.gmra.mxu1 %vm164_vm0, %v346_v38 }
  0x41   :  { %204 = vmatmul.bf16.gmra.mxu0 %v334_v43 }
  0x42   :  { %219 = vmatmul.bf16.gmra.mxu2 %v358_v44 }
  0x46   :  { %403 = vmatmul.msk.bf16.gmra.mxu1 %vm164_vm0, %v354_v47 }
  0x52   :  { %224 = vmatmul.bf16.gmra.mxu2 %v101_v49 }
  0x83   :  { %v238_v50 = vpop.f32.mrf.mxu1 }
  0x8b   :  { %v240_v51 = vpop.f32.mrf.mxu1  ;;  %v263_v55 = vpop.f32.mrf.mxu3 }
  0x93   :  { %v243_v52 = vpop.f32.mrf.mxu1  ;;  %v265_v61 = vpop.f32.mrf.mxu3 }
  0x9b   :  { %v245_v53 = vpop.f32.mrf.mxu1  ;;  %v268_v7 = vpop.f32.mrf.mxu3 }
  0x9e   :  { %v195_v54 = vpop.f32.mrf.mxu0 }
  0x9f   :  { %v196_v57 = vadd.f32 %v604_v56, %v195_v54 }
  0xa1   :  { %v239_v62 = vadd.f32 %v238_v50, %v196_v57 }
  0xa3   :  { %v248_v58 = vpop.f32.mrf.mxu1  ;;  %v272_v1 = vmax.f32 %v239_v62, 0.0  ;;  %v270_v12 = vpop.f32.mrf.mxu3 }
  0xa5   :  { %v210_v59 = vpop.f32.mrf.mxu2 }
  0xa6   :  { %v197_v60 = vpop.f32.mrf.mxu0  ;;  %v211_v15 = vadd.f32 %v604_v56, %v210_v59 }
  0xa7   :  { %v198_v63 = vadd.f32 %v604_v56, %v197_v60 }
  0xa9   :  { %v241_v0 = vadd.f32 %v240_v51, %v198_v63 }
  0xab   :  { %v273_v2 = vmax.f32 %v241_v0, 0.0  ;;  %v250_v3 = vpop.f32.mrf.mxu1 }
  0xad   :  { %v430_v4 = vpack.c.bf16 %v273_v2, %v272_v1  ;;  %v212_v5 = vpop.f32.mrf.mxu2 }
  0xae   :  { %v200_v6 = vpop.f32.mrf.mxu0  ;;  %v213_v17 = vadd.f32 %v604_v56, %v212_v5 }
  0xaf   :  { %431 = vst [vmem:[%s643_s3] sm:$0xff] %v430_v4   ;;  %v201_v8 = vadd.f32 %v604_v56, %v200_v6 }
  0xb1   :  { %v244_v13 = vadd.f32 %v243_v52, %v201_v8 }
  0xb3   :  { %v253_v9 = vpop.f32.mrf.mxu1  ;;  %v274_v19 = vmax.f32 %v244_v13, 0.0 }
  0xb4   :  { %v254_v18 = vadd.f32 %v253_v9, %v211_v15 }
  0xb5   :  { %v215_v10 = vpop.f32.mrf.mxu2 }
  0xb6   :  { %v202_v11 = vpop.f32.mrf.mxu0  ;;  %v278_v25 = vmax.f32 %v254_v18, 0.0  ;;  %v216_v35 = vadd.f32 %v604_v56, %v215_v10 }
  0xb7   :  { %v203_v14 = vadd.f32 %v604_v56, %v202_v11 }
  0xb9   :  { %v246_v16 = vadd.f32 %v245_v53, %v203_v14 }
  0xbb   :  { %v275_v20 = vmax.f32 %v246_v16, 0.0  ;;  %v255_v21 = vpop.f32.mrf.mxu1 }
  0xbc   :  { %v256_v22 = vadd.f32 %v255_v21, %v213_v17 }
  0xbd   :  { %v435_v23 = vpack.c.bf16 %v275_v20, %v274_v19  ;;  %v217_v24 = vpop.f32.mrf.mxu2 }
  0xbe   :  { %v279_v26 = vmax.f32 %v256_v22, 0.0  ;;  %v205_v27 = vpop.f32.mrf.mxu0  ;;  %v218_v37 = vadd.f32 %v604_v56, %v217_v24 }
  0xbf   :  { %457 = vst [vmem:[%s643_s3 + $0x8] sm:$0xff] %v435_v23   ;;  %v206_v29 = vadd.f32 %v604_v56, %v205_v27 }
  0xc0   :  { %v445_v28 = vpack.c.bf16 %v279_v26, %v278_v25 }
  0xc1   :  { %v249_v33 = vadd.f32 %v248_v58, %v206_v29 }
  0xc2   :  { %459 = vst [vmem:[%s643_s3 + $0x18] sm:$0xff] %v445_v28  }
  0xc3   :  { %v258_v30 = vpop.f32.mrf.mxu1  ;;  %v276_v40 = vmax.f32 %v249_v33, 0.0 }
  0xc4   :  { %v259_v38 = vadd.f32 %v258_v30, %v216_v35 }
  0xc5   :  { %v220_v31 = vpop.f32.mrf.mxu2 }
  0xc6   :  { %v207_v32 = vpop.f32.mrf.mxu0  ;;  %v221_v39 = vadd.f32 %v604_v56, %v220_v31  ;;  %v280_v46 = vmax.f32 %v259_v38, 0.0 }
  0xc7   :  { %v208_v34 = vadd.f32 %v604_v56, %v207_v32 }
  0xc8   :  { %v264_v47 = vadd.f32 %v263_v55, %v221_v39 }
  0xc9   :  { %v251_v36 = vadd.f32 %v250_v3, %v208_v34 }
  0xca   :  { %v282_v52 = vmax.f32 %v264_v47, 0.0 }
  0xcb   :  { %v277_v41 = vmax.f32 %v251_v36, 0.0  ;;  %v260_v42 = vpop.f32.mrf.mxu1 }
  0xcc   :  { %v261_v43 = vadd.f32 %v260_v42, %v218_v37 }
  0xcd   :  { %v440_v44 = vpack.c.bf16 %v277_v41, %v276_v40  ;;  %v222_v45 = vpop.f32.mrf.mxu2 }
  0xce   :  { %v281_v48 = vmax.f32 %v261_v43, 0.0  ;;  %v223_v49 = vadd.f32 %v604_v56, %v222_v45 }
  0xcf   :  { %458 = vst [vmem:[%s643_s3 + $0x10] sm:$0xff] %v440_v44  }
  0xd0   :  { %v450_v50 = vpack.c.bf16 %v281_v48, %v280_v46  ;;  %v266_v51 = vadd.f32 %v265_v61, %v223_v49 }
  0xd2   :  { %460 = vst [vmem:[%s643_s3 + $0x20] sm:$0xff] %v450_v50   ;;  %v283_v53 = vmax.f32 %v266_v51, 0.0 }
  0xd4   :  { %v455_v54 = vpack.c.bf16 %v283_v53, %v282_v52 }
  0xd5   :  { %v225_v57 = vpop.f32.mrf.mxu2 }
  0xd6   :  { %461 = vst [vmem:[%s643_s3 + $0x28] sm:$0xff] %v455_v54   ;;  %v226_v55 = vadd.f32 %v604_v56, %v225_v57 }
  0xd8   :  { %v269_v58 = vadd.f32 %v268_v7, %v226_v55 }
  0xda   :  { %v284_v59 = vmax.f32 %v269_v58, 0.0 }
  0xdc   :  { %v297_v60 = vpack.c.bf16 %v284_v59, %v284_v59 }
  0xdd   :  { %v227_v62 = vpop.f32.mrf.mxu2 }
  0xde   :  { %310 = vst [vmem:[%s643_s3 + $0x30] sm:$0x1] %v297_v60 }

// kernel: sparse_conv_autoencoder_forward.8
= control target key start
LH: loop header
LB: loop body
LE: loop exit
PB: predicated region body
PF: predicated region fallthrough
CT: control target
= control target key end

     0   :  { %s440_s1 = inlined_call_operand.vmem [shape: bf16[128,128], index: 1, kind: input, shape index: {}]   ;;  %s441_s2 = inlined_call_operand.vmem [shape: f32[1,128], index: 2, kind: input, shape index: {}]   ;;  %s442_s0 = inlined_call_operand.vmem [shape: bf16[98,128], index: 0, kind: input, shape index: {}]   ;;  %s443_s3 = inlined_call_operand.vmem [shape: bf16[98,128], index: 3, kind: output, shape index: {}]  }
   0x1   :  { %v290_v0 = vld [vmem:[%s440_s1 + $0x38] sm:$0xff]  ;;  %v289_v1 = vld [vmem:[%s440_s1 + $0x30] sm:$0xff]  ;;  %v288_v2 = vld [vmem:[%s440_s1 + $0x28] sm:$0xff] }
   0x2   :  { %326 = vmatpush.bf16.msra.mxu1 %v290_v0  ;;  %327 = vmatpush.bf16.msra.mxu2 %v290_v0  ;;  %v287_v3 = vld [vmem:[%s440_s1 + $0x20] sm:$0xff]  ;;  %v286_v4 = vld [vmem:[%s440_s1 + $0x18] sm:$0xff]  ;;  %v285_v5 = vld [vmem:[%s440_s1 + $0x10] sm:$0xff] }
   0x3   :  { %328 = vmatpush.bf16.msra.mxu3 %v290_v0  ;;  %135 = vmatpush.bf16.msra.mxu0 %v290_v0  ;;  %v284_v6 = vld [vmem:[%s440_s1 + $0x8] sm:$0xff]  ;;  %v283_v7 = vld [vmem:[%s440_s1] sm:$0xff]  ;;  %v280_v9 = vld [vmem:[%s442_s0 + $0x18] sm:$0xff] }
   0x4   :  { %v278_v8 = vld [vmem:[%s442_s0 + $0x8] sm:$0xff]  ;;  %v277_v11 = vld [vmem:[%s442_s0] sm:$0xff]  ;;  %v26_v12 = vld [vmem:[%s442_s0 + $0x30] sm:$0x1] }
   0x5   :  { %v282_v10 = vld [vmem:[%s442_s0 + $0x28] sm:$0xff]  ;;  %v72_v13 = vunpack.c.l.b16 %v26_v12  ;;  %v279_v14 = vld [vmem:[%s442_s0 + $0x10] sm:$0xff]  ;;  %v281_v15 = vld [vmem:[%s442_s0 + $0x20] sm:$0xff] }
   0x6   :  { %329 = vmatpush.bf16.msra.mxu1 %v289_v1  ;;  %330 = vmatpush.bf16.msra.mxu2 %v289_v1  ;;  %v350_v19 = vld [vmem:[%s441_s2] ss:$0 sm:$0xff] }
   0x7   :  { %331 = vmatpush.bf16.msra.mxu3 %v289_v1  ;;  %136 = vmatpush.bf16.msra.mxu0 %v289_v1  ;;  %v79_v16 = vpack.c.b16 %v72_v13, %v72_v13 }
   0xa   :  { %332 = vmatpush.bf16.msra.mxu1 %v288_v2  ;;  %333 = vmatpush.bf16.msra.mxu2 %v288_v2 }
   0xb   :  { %334 = vmatpush.bf16.msra.mxu3 %v288_v2  ;;  %137 = vmatpush.bf16.msra.mxu0 %v288_v2 }
   0xe   :  { %335 = vmatpush.bf16.msra.mxu1 %v287_v3  ;;  %336 = vmatpush.bf16.msra.mxu2 %v287_v3 }
   0xf   :  { %337 = vmatpush.bf16.msra.mxu3 %v287_v3  ;;  %138 = vmatpush.bf16.msra.mxu0 %v287_v3 }
  0x12   :  { %338 = vmatpush.bf16.msra.mxu1 %v286_v4  ;;  %339 = vmatpush.bf16.msra.mxu2 %v286_v4 }
  0x13   :  { %340 = vmatpush.bf16.msra.mxu3 %v286_v4  ;;  %139 = vmatpush.bf16.msra.mxu0 %v286_v4 }
  0x16   :  { %341 = vmatpush.bf16.msra.mxu1 %v285_v5  ;;  %342 = vmatpush.bf16.msra.mxu2 %v285_v5 }
  0x17   :  { %343 = vmatpush.bf16.msra.mxu3 %v285_v5  ;;  %140 = vmatpush.bf16.msra.mxu0 %v285_v5 }
  0x1a   :  { %344 = vmatpush.bf16.msra.mxu1 %v284_v6  ;;  %345 = vmatpush.bf16.msra.mxu2 %v284_v6 }
  0x1b   :  { %346 = vmatpush.bf16.msra.mxu3 %v284_v6  ;;  %141 = vmatpush.bf16.msra.mxu0 %v284_v6 }
  0x1e   :  { %347 = vmatpush.bf16.msra.mxu1 %v283_v7  ;;  %348 = vmatpush.bf16.msra.mxu2 %v283_v7 }
  0x1f   :  { %349 = vmatpush.bf16.msra.mxu3 %v283_v7  ;;  %142 = vmatpush.bf16.msra.mxu0 %v283_v7 }
  0x21   :  { %148 = vmatmul.bf16.vlgmr.msra.gmra.mxu1 %v278_v8  ;;  %158 = vmatmul.bf16.vlgmr.msra.gmra.mxu2 %v280_v9 }
  0x22   :  { %168 = vmatmul.bf16.vlgmr.msra.gmra.mxu3 %v282_v10  ;;  %143 = vmatmul.bf16.vlgmr.msra.gmra.mxu0 %v277_v11 }
  0x31   :  { %153 = vmatmul.bf16.gmra.mxu1 %v279_v14  ;;  %163 = vmatmul.bf16.gmra.mxu2 %v281_v15 }
  0x32   :  { %173 = vmatmul.bf16.gmra.mxu3 %v79_v16 }
  0x9e   :  { %v149_v17 = vpop.f32.mrf.mxu1 }
  0x9f   :  { %v144_v18 = vpop.f32.mrf.mxu0  ;;  %v150_v22 = vadd.f32 %v350_v19, %v149_v17 }
  0xa0   :  { %v145_v21 = vadd.f32 %v350_v19, %v144_v18 }
  0xa1   :  { %v180_v29 = vmax.f32 %v150_v22, 0.0 }
  0xa2   :  { %v178_v27 = vmax.f32 %v145_v21, 0.0 }
  0xa4   :  { %v159_v20 = vpop.f32.mrf.mxu2 }
  0xa5   :  { %v169_v23 = vpop.f32.mrf.mxu3  ;;  %v160_v33 = vadd.f32 %v350_v19, %v159_v20 }
  0xa6   :  { %v151_v24 = vpop.f32.mrf.mxu1  ;;  %v170_v31 = vadd.f32 %v350_v19, %v169_v23 }
  0xa7   :  { %v152_v25 = vadd.f32 %v350_v19, %v151_v24  ;;  %v146_v26 = vpop.f32.mrf.mxu0  ;;  %v184_v42 = vmax.f32 %v160_v33, 0.0 }
  0xa8   :  { %v147_v28 = vadd.f32 %v350_v19, %v146_v26  ;;  %v188_v39 = vmax.f32 %v170_v31, 0.0 }
  0xa9   :  { %v181_v30 = vmax.f32 %v152_v25, 0.0 }
  0xaa   :  { %v179_v32 = vmax.f32 %v147_v28, 0.0 }
  0xab   :  { %v299_v34 = vpack.c.bf16 %v181_v30, %v180_v29 }
  0xac   :  { %v161_v35 = vpop.f32.mrf.mxu2  ;;  %v294_v36 = vpack.c.bf16 %v179_v32, %v178_v27 }
  0xad   :  { %321 = vst [vmem:[%s443_s3 + $0x8] sm:$0xff] %v299_v34   ;;  %v162_v37 = vadd.f32 %v350_v19, %v161_v35  ;;  %v171_v38 = vpop.f32.mrf.mxu3 }
  0xae   :  { %v172_v40 = vadd.f32 %v350_v19, %v171_v38  ;;  %v154_v41 = vpop.f32.mrf.mxu1  ;;  %295 = vst [vmem:[%s443_s3] sm:$0xff] %v294_v36  }
  0xaf   :  { %v185_v43 = vmax.f32 %v162_v37, 0.0  ;;  %v155_v48 = vadd.f32 %v350_v19, %v154_v41 }
  0xb0   :  { %v189_v44 = vmax.f32 %v172_v40, 0.0 }
  0xb1   :  { %v309_v45 = vpack.c.bf16 %v185_v43, %v184_v42  ;;  %v182_v54 = vmax.f32 %v155_v48, 0.0 }
  0xb2   :  { %v319_v46 = vpack.c.bf16 %v189_v44, %v188_v39 }
  0xb3   :  { %323 = vst [vmem:[%s443_s3 + $0x18] sm:$0xff] %v309_v45  }
  0xb4   :  { %325 = vst [vmem:[%s443_s3 + $0x28] sm:$0xff] %v319_v46   ;;  %v164_v47 = vpop.f32.mrf.mxu2 }
  0xb5   :  { %v174_v49 = vpop.f32.mrf.mxu3  ;;  %v165_v57 = vadd.f32 %v350_v19, %v164_v47 }
  0xb6   :  { %v175_v50 = vadd.f32 %v350_v19, %v174_v49  ;;  %v156_v51 = vpop.f32.mrf.mxu1 }
  0xb7   :  { %v157_v52 = vadd.f32 %v350_v19, %v156_v51  ;;  %v186_v62 = vmax.f32 %v165_v57, 0.0 }
  0xb8   :  { %v190_v53 = vmax.f32 %v175_v50, 0.0 }
  0xb9   :  { %v183_v55 = vmax.f32 %v157_v52, 0.0 }
  0xba   :  { %v203_v56 = vpack.c.bf16 %v190_v53, %v190_v53 }
  0xbb   :  { %v304_v58 = vpack.c.bf16 %v183_v55, %v182_v54 }
  0xbc   :  { %216 = vst [vmem:[%s443_s3 + $0x30] sm:$0x1] %v203_v56  ;;  %v166_v59 = vpop.f32.mrf.mxu2 }
  0xbd   :  { %322 = vst [vmem:[%s443_s3 + $0x10] sm:$0xff] %v304_v58   ;;  %v167_v60 = vadd.f32 %v350_v19, %v166_v59  ;;  %v176_v61 = vpop.f32.mrf.mxu3 }
  0xbf   :  { %v187_v63 = vmax.f32 %v167_v60, 0.0 }
  0xc1   :  { %v314_v0 = vpack.c.bf16 %v187_v63, %v186_v62 }
  0xc3   :  { %324 = vst [vmem:[%s443_s3 + $0x20] sm:$0xff] %v314_v0  }

// kernel: sparse_conv_autoencoder_forward.7
= control target key start
LH: loop header
LB: loop body
LE: loop exit
PB: predicated region body
PF: predicated region fallthrough
CT: control target
= control target key end

     0   :  { %s2674_s0 = inlined_call_operand.vmem [shape: bf16[2,1568], index: 0, kind: input, shape index: {}]   ;;  %s2675_s1 = inlined_call_operand.vmem [shape: bf16[1568,32], index: 1, kind: input, shape index: {}]   ;;  %s2676_s2 = inlined_call_operand.vmem [shape: f32[1,32], index: 2, kind: input, shape index: {}]   ;;  %s2677_s3 = inlined_call_operand.vmem [shape: bf16[32,1568], index: 3, kind: input, shape index: {}]   ;;  %s2678_s4 = inlined_call_operand.vmem [shape: f32[1,1568], index: 4, kind: input, shape index: {}]   ;;  %s2679_s5 = inlined_call_operand.hbm [shape: f32[2,32], index: 5, kind: output, shape index: {0}]   ;;  %s2680_s6 = inlined_call_operand.vmem [shape: bf16[2,1568], index: 6, kind: output, shape index: {1}]  }
   0x1   :  { %v1989_v0 = vld [vmem:[%s2675_s1 + $0x38] sm:$0xff]  ;;  %v1988_v4 = vld [vmem:[%s2675_s1 + $0x30] sm:$0xff]  ;;  %v1987_v8 = vld [vmem:[%s2675_s1 + $0x28] sm:$0xff] }
   0x2   :  { %v2005_v1 = vld [vmem:[%s2675_s1 + $0xb8] sm:$0xff]  ;;  %846 = vmatpush.bf16.msra.mxu0 %v1989_v0  ;;  %v2004_v5 = vld [vmem:[%s2675_s1 + $0xb0] sm:$0xff]  ;;  %v2003_v9 = vld [vmem:[%s2675_s1 + $0xa8] sm:$0xff] }
   0x3   :  { %v2013_v2 = vld [vmem:[%s2675_s1 + $0xf8] sm:$0xff]  ;;  %872 = vmatpush.bf16.msra.mxu2 %v2005_v1  ;;  %v2012_v6 = vld [vmem:[%s2675_s1 + $0xf0] sm:$0xff]  ;;  %v2011_v10 = vld [vmem:[%s2675_s1 + $0xe8] sm:$0xff] }
   0x4   :  { %v1997_v3 = vld [vmem:[%s2675_s1 + $0x78] sm:$0xff]  ;;  %885 = vmatpush.bf16.msra.mxu3 %v2013_v2  ;;  %v1996_v7 = vld [vmem:[%s2675_s1 + $0x70] sm:$0xff]  ;;  %v1995_v11 = vld [vmem:[%s2675_s1 + $0x68] sm:$0xff] }
   0x5   :  { %859 = vmatpush.bf16.msra.mxu1 %v1997_v3  ;;  %v1986_v12 = vld [vmem:[%s2675_s1 + $0x20] sm:$0xff]  ;;  %v1985_v16 = vld [vmem:[%s2675_s1 + $0x18] sm:$0xff]  ;;  %v1984_v21 = vld [vmem:[%s2675_s1 + $0x10] sm:$0xff] }
   0x6   :  { %847 = vmatpush.bf16.msra.mxu0 %v1988_v4  ;;  %v2002_v13 = vld [vmem:[%s2675_s1 + $0xa0] sm:$0xff]  ;;  %v2001_v17 = vld [vmem:[%s2675_s1 + $0x98] sm:$0xff]  ;;  %v2000_v22 = vld [vmem:[%s2675_s1 + $0x90] sm:$0xff] }
   0x7   :  { %873 = vmatpush.bf16.msra.mxu2 %v2004_v5  ;;  %v2010_v14 = vld [vmem:[%s2675_s1 + $0xe0] sm:$0xff]  ;;  %v2009_v18 = vld [vmem:[%s2675_s1 + $0xd8] sm:$0xff]  ;;  %v2008_v23 = vld [vmem:[%s2675_s1 + $0xd0] sm:$0xff] }
   0x8   :  { %886 = vmatpush.bf16.msra.mxu3 %v2012_v6  ;;  %v1994_v15 = vld [vmem:[%s2675_s1 + $0x60] sm:$0xff]  ;;  %v1993_v19 = vld [vmem:[%s2675_s1 + $0x58] sm:$0xff]  ;;  %v1992_v24 = vld [vmem:[%s2675_s1 + $0x50] sm:$0xff] }
   0x9   :  { %860 = vmatpush.bf16.msra.mxu1 %v1996_v7  ;;  %v24_v20 = vld [vmem:[%s2674_s0] sm:$0xff] }
   0xa   :  { %848 = vmatpush.bf16.msra.mxu0 %v1987_v8  ;;  %227 = vst [vmem:[#allocation1] ss:$9 sm:$0xff] %v24_v20 }
   0xb   :  { %874 = vmatpush.bf16.msra.mxu2 %v2003_v9 }
   0xc   :  { %887 = vmatpush.bf16.msra.mxu3 %v2011_v10 }
   0xd   :  { %861 = vmatpush.bf16.msra.mxu1 %v1995_v11 }
   0xe   :  { %849 = vmatpush.bf16.msra.mxu0 %v1986_v12 }
   0xf   :  { %875 = vmatpush.bf16.msra.mxu2 %v2002_v13 }
  0x10   :  { %888 = vmatpush.bf16.msra.mxu3 %v2010_v14 }
  0x11   :  { %862 = vmatpush.bf16.msra.mxu1 %v1994_v15 }
  0x12   :  { %850 = vmatpush.bf16.msra.mxu0 %v1985_v16 }
  0x13   :  { %876 = vmatpush.bf16.msra.mxu2 %v2001_v17 }
  0x14   :  { %889 = vmatpush.bf16.msra.mxu3 %v2009_v18 }
  0x15   :  { %863 = vmatpush.bf16.msra.mxu1 %v1993_v19 }
  0x16   :  { %12 = vsyncpa [#allocation3], 0  ;;  %851 = vmatpush.bf16.msra.mxu0 %v1984_v21  ;;  %v1983_v25 = vld [vmem:[%s2675_s1 + $0x8] sm:$0xff]  ;;  %v1982_v29 = vld [vmem:[%s2675_s1] sm:$0xff]  ;;  %vm843_vm0 = vcmask 261120   ;;  %vm1015_vm1 = vcmask 254976  }
  0x17   :  { %877 = vmatpush.bf16.msra.mxu2 %v2000_v22  ;;  %v1999_v26 = vld [vmem:[%s2675_s1 + $0x88] sm:$0xff]  ;;  %v1998_v30 = vld [vmem:[%s2675_s1 + $0x80] sm:$0xff]  ;;  %v2021_v32 = vld [vmem:[%s2675_s1 + $0x138] sm:$0xff]  ;;  %s1459_s24 = sshll.u32 %s2679_s5, 4  ;;  %vm1406_vm2 = vcmask 1040384   ;;  %vm1410_vm3 = vcmask 1042434   ;;  %s1460_s24 = int_to_ptr.hbm [resolvable:$true] %s1459_s24 }
  0x18   :  { %890 = vmatpush.bf16.msra.mxu3 %v2008_v23  ;;  %v2007_v27 = vld [vmem:[%s2675_s1 + $0xc8] sm:$0xff]  ;;  %v2006_v31 = vld [vmem:[%s2675_s1 + $0xc0] sm:$0xff]  ;;  %v2037_v33 = vld [vmem:[%s2675_s1 + $0x1b8] sm:$0xff]  ;;  %vm1414_vm4 = vcmask 1041408   ;;  %vm1416_vm5 = vcmask 1044484   ;;  %vm1420_vm6 = vcmask 1046534  }
  0x19   :  { %864 = vmatpush.bf16.msra.mxu1 %v1992_v24  ;;  %v1991_v28 = vld [vmem:[%s2675_s1 + $0x48] sm:$0xff]  ;;  %v2045_v34 = vld [vmem:[%s2675_s1 + $0x1f8] sm:$0xff]  ;;  %v1990_v35 = vld [vmem:[%s2675_s1 + $0x40] sm:$0xff]  ;;  %vm1424_vm7 = vcmask 1045508   ;;  %vm1426_vm8 = vcmask 1043456   ;;  %vm1445_vm9 = vcmask 1041409  }
  0x1a   :  { %852 = vmatpush.bf16.msra.mxu0 %v1983_v25  ;;  %v2029_v36 = vld [vmem:[%s2675_s1 + $0x178] sm:$0xff]  ;;  %v2020_v38 = vld [vmem:[%s2675_s1 + $0x130] sm:$0xff]  ;;  %v228_v39 = vld [vmem:[#allocation1] sm:$0xff]  ;;  %vm1433_vm11 = vcmask 1043459   ;;  %vm1437_vm13 = vcmask 1044483   ;;  %vm1449_vm15 = vcmask 258052  }
  0x1b   :  { %878 = vmatpush.bf16.msra.mxu2 %v1999_v26  ;;  %v230_v37 = vld [vmem:[#allocation1 + $0x12] sm:$0xff]  ;;  %v231_v42 = vld [vmem:[#allocation1 + $0x1b] sm:$0xff]  ;;  %v229_v44 = vld [vmem:[#allocation1 + $0x9] sm:$0xff] }
  0x1c   :  { %891 = vmatpush.bf16.msra.mxu3 %v2007_v27  ;;  %v2036_v40 = vld [vmem:[%s2675_s1 + $0x1b0] sm:$0xff]  ;;  %v2019_v45 = vld [vmem:[%s2675_s1 + $0x128] sm:$0xff]  ;;  %v235_v51 = vld [vmem:[#allocation1 + $0x3f] sm:$0xff] }
  0x1d   :  { %865 = vmatpush.bf16.msra.mxu1 %v1991_v28  ;;  %v2044_v41 = vld [vmem:[%s2675_s1 + $0x1f0] sm:$0xff]  ;;  %v2035_v46 = vld [vmem:[%s2675_s1 + $0x1a8] sm:$0xff]  ;;  %v2018_v54 = vld [vmem:[%s2675_s1 + $0x120] sm:$0xff] }
  0x1e   :  { %853 = vmatpush.bf16.msra.mxu0 %v1982_v29  ;;  %v2028_v43 = vld [vmem:[%s2675_s1 + $0x170] sm:$0xff]  ;;  %v2043_v47 = vld [vmem:[%s2675_s1 + $0x1e8] sm:$0xff]  ;;  %v2034_v55 = vld [vmem:[%s2675_s1 + $0x1a0] sm:$0xff] }
  0x1f   :  { %879 = vmatpush.bf16.msra.mxu2 %v1998_v30  ;;  %v2027_v48 = vld [vmem:[%s2675_s1 + $0x168] sm:$0xff]  ;;  %v234_v49 = vld [vmem:[#allocation1 + $0x36] sm:$0xff]  ;;  %v2042_v56 = vld [vmem:[%s2675_s1 + $0x1e0] sm:$0xff] }
  0x20   :  { %892 = vmatpush.bf16.msra.mxu3 %v2006_v31  ;;  %v232_v50 = vld [vmem:[#allocation1 + $0x24] sm:$0xff]  ;;  %v2308_v53 = vld [vmem:[#allocation1 + $0x2d] sm:$0xff]  ;;  %v2017_v58 = vld [vmem:[%s2675_s1 + $0x118] sm:$0xff] }
  0x21   :  { %866 = vmatpush.bf16.msra.mxu1 %v1990_v35  ;;  %854 = vmatmul.bf16.vlgmr.msra.gmra.mxu0 %v228_v39  ;;  %v25_v52 = vld [vmem:[%s2674_s0 + $0x8] sm:$0x1f]  ;;  %v2026_v57 = vld [vmem:[%s2675_s1 + $0x160] sm:$0xff]  ;;  %v2033_v59 = vld [vmem:[%s2675_s1 + $0x198] sm:$0xff] }
  0x22   :  { %898 = vmatpush.bf16.msrb.mxu0 %v2021_v32  ;;  %880 = vmatmul.bf16.vlgmr.msra.gmra.mxu2 %v230_v37  ;;  %237 = vst [vmem:[#allocation1] ss:$9 sm:$0xff] %v25_v52  ;;  %v2041_v60 = vld [vmem:[%s2675_s1 + $0x1d8] sm:$0xff]  ;;  %v2016_v62 = vld [vmem:[%s2675_s1 + $0x110] sm:$0xff]  ;;  %v2015_v2 = vld [vmem:[%s2675_s1 + $0x108] sm:$0xff] }
  0x23   :  { %924 = vmatpush.bf16.msrb.mxu2 %v2037_v33  ;;  %893 = vmatmul.bf16.vlgmr.msra.gmra.mxu3 %v231_v42  ;;  %v2025_v61 = vld [vmem:[%s2675_s1 + $0x158] sm:$0xff]  ;;  %v2032_v63 = vld [vmem:[%s2675_s1 + $0x190] sm:$0xff]  ;;  %v2031_v3 = vld [vmem:[%s2675_s1 + $0x188] sm:$0xff] }
  0x24   :  { %937 = vmatpush.bf16.msrb.mxu3 %v2045_v34  ;;  %867 = vmatmul.bf16.vlgmr.msra.gmra.mxu1 %v229_v44  ;;  %v2040_v0 = vld [vmem:[%s2675_s1 + $0x1d0] sm:$0xff]  ;;  %v2039_v4 = vld [vmem:[%s2675_s1 + $0x1c8] sm:$0xff]  ;;  %v2014_v6 = vld [vmem:[%s2675_s1 + $0x100] sm:$0xff] }
  0x25   :  { %911 = vmatpush.bf16.msrb.mxu1 %v2029_v36  ;;  %v2024_v1 = vld [vmem:[%s2675_s1 + $0x150] sm:$0xff]  ;;  %v2023_v5 = vld [vmem:[%s2675_s1 + $0x148] sm:$0xff]  ;;  %v2030_v7 = vld [vmem:[%s2675_s1 + $0x180] sm:$0xff] }
  0x26   :  { %899 = vmatpush.bf16.msrb.mxu0 %v2020_v38  ;;  %v2038_v8 = vld [vmem:[%s2675_s1 + $0x1c0] sm:$0xff]  ;;  %v2053_v9 = vld [vmem:[%s2675_s1 + $0x238] sm:$0xff]  ;;  %v2052_v14 = vld [vmem:[%s2675_s1 + $0x230] sm:$0xff] }
  0x27   :  { %925 = vmatpush.bf16.msrb.mxu2 %v2036_v40  ;;  %v2069_v10 = vld [vmem:[%s2675_s1 + $0x2b8] sm:$0xff]  ;;  %v2022_v12 = vld [vmem:[%s2675_s1 + $0x140] sm:$0xff]  ;;  %v2068_v15 = vld [vmem:[%s2675_s1 + $0x2b0] sm:$0xff] }
  0x28   :  { %938 = vmatpush.bf16.msrb.mxu3 %v2044_v41  ;;  %v2077_v11 = vld [vmem:[%s2675_s1 + $0x2f8] sm:$0xff]  ;;  %v2076_v16 = vld [vmem:[%s2675_s1 + $0x2f0] sm:$0xff]  ;;  %v2051_v18 = vld [vmem:[%s2675_s1 + $0x228] sm:$0xff] }
  0x29   :  { %912 = vmatpush.bf16.msrb.mxu1 %v2028_v43  ;;  %v2061_v13 = vld [vmem:[%s2675_s1 + $0x278] sm:$0xff]  ;;  %v2060_v17 = vld [vmem:[%s2675_s1 + $0x270] sm:$0xff]  ;;  %v2067_v19 = vld [vmem:[%s2675_s1 + $0x2a8] sm:$0xff] }
  0x2a   :  { %900 = vmatpush.bf16.msrb.mxu0 %v2019_v45  ;;  %v2075_v20 = vld [vmem:[%s2675_s1 + $0x2e8] sm:$0xff]  ;;  %v2050_v22 = vld [vmem:[%s2675_s1 + $0x220] sm:$0xff]  ;;  %v2049_v26 = vld [vmem:[%s2675_s1 + $0x218] sm:$0xff] }
  0x2b   :  { %926 = vmatpush.bf16.msrb.mxu2 %v2035_v46  ;;  %v2059_v21 = vld [vmem:[%s2675_s1 + $0x268] sm:$0xff]  ;;  %v2066_v23 = vld [vmem:[%s2675_s1 + $0x2a0] sm:$0xff]  ;;  %v2065_v27 = vld [vmem:[%s2675_s1 + $0x298] sm:$0xff] }
  0x2c   :  { %939 = vmatpush.bf16.msrb.mxu3 %v2043_v47  ;;  %v2074_v24 = vld [vmem:[%s2675_s1 + $0x2e0] sm:$0xff]  ;;  %v2073_v28 = vld [vmem:[%s2675_s1 + $0x2d8] sm:$0xff]  ;;  %v2048_v30 = vld [vmem:[%s2675_s1 + $0x210] sm:$0xff] }
  0x2d   :  { %913 = vmatpush.bf16.msrb.mxu1 %v2027_v48  ;;  %v2058_v25 = vld [vmem:[%s2675_s1 + $0x260] sm:$0xff]  ;;  %v2057_v29 = vld [vmem:[%s2675_s1 + $0x258] sm:$0xff]  ;;  %v2064_v31 = vld [vmem:[%s2675_s1 + $0x290] sm:$0xff] }
  0x2e   :  { %901 = vmatpush.bf16.msrb.mxu0 %v2018_v54  ;;  %v2072_v32 = vld [vmem:[%s2675_s1 + $0x2d0] sm:$0xff]  ;;  %v2047_v34 = vld [vmem:[%s2675_s1 + $0x208] sm:$0xff]  ;;  %v2046_v38 = vld [vmem:[%s2675_s1 + $0x200] sm:$0xff] }
  0x2f   :  { %927 = vmatpush.bf16.msrb.mxu2 %v2034_v55  ;;  %v2056_v33 = vld [vmem:[%s2675_s1 + $0x250] sm:$0xff]  ;;  %v2063_v35 = vld [vmem:[%s2675_s1 + $0x288] sm:$0xff]  ;;  %v2062_v39 = vld [vmem:[%s2675_s1 + $0x280] sm:$0xff] }
  0x30   :  { %940 = vmatpush.bf16.msrb.mxu3 %v2042_v56  ;;  %v2071_v36 = vld [vmem:[%s2675_s1 + $0x2c8] sm:$0xff]  ;;  %v2070_v40 = vld [vmem:[%s2675_s1 + $0x2c0] sm:$0xff]  ;;  %v240_v44 = vld [vmem:[#allocation1 + $0x12] sm:$0xff] }
  0x31   :  { %914 = vmatpush.bf16.msrb.mxu1 %v2026_v57  ;;  %v2055_v37 = vld [vmem:[%s2675_s1 + $0x248] sm:$0xff]  ;;  %v2054_v42 = vld [vmem:[%s2675_s1 + $0x240] sm:$0xff]  ;;  %vm1446_vm10 = vmor %vm1445_vm9, %vm1406_vm2 }
  0x32   :  { %902 = vmatpush.bf16.msrb.mxu0 %v2017_v58  ;;  %v2079_v41 = vld [vmem:[%s2675_s1 + $0x308] sm:$0xff]  ;;  %v238_v43 = vld [vmem:[#allocation1] sm:$0xff]  ;;  %vm1447_vm12 = vmor %vm1410_vm3, %vm1446_vm10 }
  0x33   :  { %928 = vmatpush.bf16.msrb.mxu2 %v2033_v59  ;;  %v241_v45 = vld [vmem:[#allocation1 + $0x1b] sm:$0xff]  ;;  %v239_v47 = vld [vmem:[#allocation1 + $0x9] sm:$0xff]  ;;  %vm1448_vm14 = vmor %vm1433_vm11, %vm1447_vm12 }
  0x34   :  { %941 = vmatpush.bf16.msrb.mxu3 %v2041_v60  ;;  %v2078_v46 = vld [vmem:[%s2675_s1 + $0x300] sm:$0xff]  ;;  %v1919_v58 = vld [vmem:[%s2677_s3 + $0x68] sm:$0xf]  ;;  %v2099_v59 = vld [vmem:[%s2677_s3 + $0x98] sm:$0xf0] }
  0x35   :  { %915 = vmatpush.bf16.msrb.mxu1 %v2025_v61  ;;  %v242_v48 = vld [vmem:[#allocation1 + $0x24] sm:$0xff]  ;;  %v2107_v57 = vld [vmem:[%s2676_s2] ss:$0 sm:$0xff]  ;;  %v1920_v61 = vor.u32 %v2099_v59, %v1919_v58 }
  0x36   :  { %903 = vmatpush.bf16.msrb.mxu0 %v2016_v62 }
  0x37   :  { %929 = vmatpush.bf16.msrb.mxu2 %v2032_v63 }
  0x38   :  { %942 = vmatpush.bf16.msrb.mxu3 %v2040_v0 }
  0x39   :  { %916 = vmatpush.bf16.msrb.mxu1 %v2024_v1 }
  0x3a   :  { %904 = vmatpush.bf16.msrb.mxu0 %v2015_v2  ;;  %v1867_v2 = vld [vmem:[%s2677_s3] sm:$0xf] }
  0x3b   :  { %930 = vmatpush.bf16.msrb.mxu2 %v2031_v3  ;;  %v2086_v3 = vld [vmem:[%s2677_s3 + $0x30] sm:$0xf0] }
  0x3c   :  { %943 = vmatpush.bf16.msrb.mxu3 %v2039_v4 }
  0x3d   :  { %917 = vmatpush.bf16.msrb.mxu1 %v2023_v5  ;;  %v1868_v5 = vor.u32 %v2086_v3, %v1867_v2 }
  0x3e   :  { %905 = vmatpush.bf16.msrb.mxu0 %v2014_v6 }
  0x3f   :  { %931 = vmatpush.bf16.msrb.mxu2 %v2030_v7  ;;  %v2093_v7 = vld [vmem:[%s2677_s3 + $0x6c] sm:$0xf] }
  0x40   :  { %944 = vmatpush.bf16.msrb.mxu3 %v2038_v8  ;;  %v1921_v8 = vld [vmem:[%s2677_s3 + $0x9c] sm:$0xf0] }
  0x41   :  { %918 = vmatpush.bf16.msrb.mxu1 %v2022_v12  ;;  %906 = vmatmul.bf16.vlgmr.msrb.gmra.mxu0 %v232_v50  ;;  %v2094_v12 = vld [vmem:[%s2677_s3 + $0x74] sm:$0xf] }
  0x42   :  { %950 = vmatpush.bf16.msra.mxu0 %v2053_v9  ;;  %932 = vmatmul.bf16.vlgmr.msrb.gmra.mxu2 %v234_v49  ;;  %v1927_v9 = vld [vmem:[%s2677_s3 + $0x70] sm:$0xf] }
  0x43   :  { %976 = vmatpush.bf16.msra.mxu2 %v2069_v10  ;;  %945 = vmatmul.bf16.vlgmr.msrb.gmra.mxu3 %v235_v51  ;;  %v1924_v10 = vor.u32 %v2093_v7, %v1921_v8  ;;  %v2103_v8 = vld [vmem:[%s2677_s3 + $0xb8] sm:$0xf0] }
  0x44   :  { %989 = vmatpush.bf16.msra.mxu3 %v2077_v11  ;;  %919 = vmatmul.bf16.vlgmr.msrb.gmra.mxu1 %v2308_v53  ;;  %v2100_v11 = vld [vmem:[%s2677_s3 + $0xa0] sm:$0xf0] }
  0x45   :  { %963 = vmatpush.bf16.msra.mxu1 %v2061_v13  ;;  %v1929_v13 = vld [vmem:[%s2677_s3 + $0xa4] sm:$0xf0] }
  0x46   :  { %951 = vmatpush.bf16.msra.mxu0 %v2052_v14 }
  0x47   :  { %977 = vmatpush.bf16.msra.mxu2 %v2068_v15  ;;  %v1928_v15 = vor.u32 %v2100_v11, %v1927_v9  ;;  %v2097_v9 = vld [vmem:[%s2677_s3 + $0x8c] sm:$0xf]  ;;  %v1959_v11 = vld [vmem:[%s2677_s3 + $0x90] sm:$0xf] }
  0x48   :  { %990 = vmatpush.bf16.msra.mxu3 %v2076_v16  ;;  %v1932_v16 = vor.u32 %v2094_v12, %v1929_v13  ;;  %v2104_v13 = vld [vmem:[%s2677_s3 + $0xc0] sm:$0xf0] }
  0x49   :  { %964 = vmatpush.bf16.msra.mxu1 %v2060_v17 }
  0x4a   :  { %952 = vmatpush.bf16.msra.mxu0 %v2051_v18  ;;  %v2080_v18 = vld [vmem:[%s2677_s3 + $0x4] sm:$0xf] }
  0x4b   :  { %978 = vmatpush.bf16.msra.mxu2 %v2067_v19  ;;  %v1869_v19 = vld [vmem:[%s2677_s3 + $0x34] sm:$0xf0] }
  0x4c   :  { %991 = vmatpush.bf16.msra.mxu3 %v2075_v20  ;;  %v1875_v20 = vld [vmem:[%s2677_s3 + $0x8] sm:$0xf] }
  0x4d   :  { %965 = vmatpush.bf16.msra.mxu1 %v2059_v21 }
  0x4e   :  { %953 = vmatpush.bf16.msra.mxu0 %v2050_v22  ;;  %v1872_v22 = vor.u32 %v2080_v18, %v1869_v19  ;;  %v1899_v18 = vld [vmem:[%s2677_s3 + $0x20] sm:$0xf]  ;;  %v2090_v19 = vld [vmem:[%s2677_s3 + $0x50] sm:$0xf0] }
  0x4f   :  { %979 = vmatpush.bf16.msra.mxu2 %v2066_v23  ;;  %v2087_v23 = vld [vmem:[%s2677_s3 + $0x38] sm:$0xf0] }
  0x50   :  { %992 = vmatpush.bf16.msra.mxu3 %v2074_v24  ;;  %v2081_v24 = vld [vmem:[%s2677_s3 + $0xc] sm:$0xf] }
  0x51   :  { %966 = vmatpush.bf16.msra.mxu1 %v2058_v25 }
  0x52   :  { %954 = vmatpush.bf16.msra.mxu0 %v2049_v26  ;;  %v1876_v26 = vor.u32 %v2087_v23, %v1875_v20  ;;  %v2084_v23 = vld [vmem:[%s2677_s3 + $0x24] sm:$0xf] }
  0x53   :  { %980 = vmatpush.bf16.msra.mxu2 %v2065_v27  ;;  %v1877_v27 = vld [vmem:[%s2677_s3 + $0x3c] sm:$0xf0] }
  0x54   :  { %993 = vmatpush.bf16.msra.mxu3 %v2073_v28 }
  0x55   :  { %967 = vmatpush.bf16.msra.mxu1 %v2057_v29  ;;  %v1880_v29 = vor.u32 %v2081_v24, %v1877_v27  ;;  %v1901_v24 = vld [vmem:[%s2677_s3 + $0x54] sm:$0xf0]  ;;  %v2085_v27 = vld [vmem:[%s2677_s3 + $0x2c] sm:$0xf] }
  0x56   :  { %955 = vmatpush.bf16.msra.mxu0 %v2048_v30  ;;  %v1935_v30 = vld [vmem:[%s2677_s3 + $0x78] sm:$0xf] }
  0x57   :  { %981 = vmatpush.bf16.msra.mxu2 %v2064_v31  ;;  %v2101_v31 = vld [vmem:[%s2677_s3 + $0xa8] sm:$0xf0] }
  0x58   :  { %994 = vmatpush.bf16.msra.mxu3 %v2072_v32 }
  0x59   :  { %968 = vmatpush.bf16.msra.mxu1 %v2056_v33  ;;  %v1936_v33 = vor.u32 %v2101_v31, %v1935_v30  ;;  %v1904_v30 = vor.u32 %v2084_v23, %v1901_v24 }
  0x5a   :  { %956 = vmatpush.bf16.msra.mxu0 %v2047_v34  ;;  %v1883_v34 = vld [vmem:[%s2677_s3 + $0x10] sm:$0xf] }
  0x5b   :  { %982 = vmatpush.bf16.msra.mxu2 %v2063_v35  ;;  %v2088_v35 = vld [vmem:[%s2677_s3 + $0x40] sm:$0xf0] }
  0x5c   :  { %995 = vmatpush.bf16.msra.mxu3 %v2071_v36  ;;  %v2095_v36 = vld [vmem:[%s2677_s3 + $0x7c] sm:$0xf] }
  0x5d   :  { %969 = vmatpush.bf16.msra.mxu1 %v2055_v37  ;;  %v1884_v37 = vor.u32 %v2088_v35, %v1883_v34  ;;  %v1967_v34 = vld [vmem:[%s2677_s3 + $0x98] sm:$0xf]  ;;  %v2105_v35 = vld [vmem:[%s2677_s3 + $0xc8] sm:$0xf0] }
  0x5e   :  { %957 = vmatpush.bf16.msra.mxu0 %v2046_v38  ;;  %v1937_v38 = vld [vmem:[%s2677_s3 + $0xac] sm:$0xf0] }
  0x5f   :  { %983 = vmatpush.bf16.msra.mxu2 %v2062_v39  ;;  %v1943_v39 = vld [vmem:[%s2677_s3 + $0x80] sm:$0xf] }
  0x60   :  { %996 = vmatpush.bf16.msra.mxu3 %v2070_v40  ;;  %v2102_v40 = vld [vmem:[%s2677_s3 + $0xb0] sm:$0xf0] }
  0x61   :  { %970 = vmatpush.bf16.msra.mxu1 %v2054_v42  ;;  %958 = vmatmul.bf16.vlgmr.msra.gmra.mxu0 %v238_v43  ;;  %v1944_v42 = vor.u32 %v2102_v40, %v1943_v39  ;;  %v2096_v43 = vld [vmem:[%s2677_s3 + $0x84] sm:$0xf] }
  0x62   :  { %1008 = vmatpush.bf16.msrb.mxu0 %v2079_v41  ;;  %984 = vmatmul.bf16.vlgmr.msra.gmra.mxu2 %v240_v44  ;;  %v1940_v41 = vor.u32 %v2095_v36, %v1937_v38  ;;  %v1945_v44 = vld [vmem:[%s2677_s3 + $0xb4] sm:$0xf0]  ;;  %v1968_v36 = vor.u32 %v2105_v35, %v1967_v34  ;;  %v2092_v38 = vld [vmem:[%s2677_s3 + $0x60] sm:$0xf0] }
  0x63   :  { %997 = vmatmul.bf16.vlgmr.msra.gmra.mxu3 %v241_v45  ;;  %1230 = vmatpush.bf16.msrb.mxu2 %v1924_v10  ;;  %v2082_v45 = vld [vmem:[%s2677_s3 + $0x14] sm:$0xf]  ;;  %v1953_v10 = vld [vmem:[%s2677_s3 + $0xbc] sm:$0xf0] }
  0x64   :  { %971 = vmatmul.bf16.vlgmr.msra.gmra.mxu1 %v239_v47  ;;  %1243 = vmatpush.bf16.msrb.mxu3 %v1928_v15  ;;  %v1948_v47 = vor.u32 %v2096_v43, %v1945_v44  ;;  %v1961_v15 = vld [vmem:[%s2677_s3 + $0xc4] sm:$0xf0]  ;;  %v1956_v20 = vor.u32 %v2097_v9, %v1953_v10 }
  0x65   :  { %1217 = vmatpush.bf16.msrb.mxu1 %v1920_v61 }
  0x66   :  { %1009 = vmatpush.bf16.msrb.mxu0 %v2078_v46 }
  0x67   :  { %1231 = vmatpush.bf16.msrb.mxu2 %v1872_v22 }
  0x68   :  { %1244 = vmatpush.bf16.msrb.mxu3 %v1876_v26  ;;  %v2091_v26 = vld [vmem:[%s2677_s3 + $0x58] sm:$0xf0] }
  0x69   :  { %1218 = vmatpush.bf16.msrb.mxu1 %v1868_v5 }
  0x6a   :  { %1256 = vmatpush.bf16.msra.mxu0 %v1932_v16 }
  0x6b   :  { %1282 = vmatpush.bf16.msra.mxu2 %v1940_v41 }
  0x6c   :  { %1295 = vmatpush.bf16.msra.mxu3 %v1944_v42 }
  0x6d   :  { %1269 = vmatpush.bf16.msra.mxu1 %v1936_v33 }
  0x6e   :  { %1257 = vmatpush.bf16.msra.mxu0 %v1880_v29  ;;  %v1900_v29 = vor.u32 %v2090_v19, %v1899_v18 }
  0x71   :  { %1864 = vmatmul.msk.bf16.vlgmr.msrb.gmra.mxu0 %vm843_vm0, %v242_v48  ;;  %v1885_v48 = vld [vmem:[%s2677_s3 + $0x44] sm:$0xf0]  ;;  %1270 = vmatpush.bf16.msra.mxu1 %v1884_v37  ;;  %v1915_v37 = vld [vmem:[%s2677_s3 + $0x30] sm:$0xf] }
  0x72   :  { %1308 = vmatpush.bf16.msrb.mxu0 %v1948_v47  ;;  %v1916_v39 = vor.u32 %v2092_v38, %v1915_v37 }
  0x9e   :  { %v855_v49 = vpop.f32.mrf.mxu0 }
  0x9f   :  { %v856_v63 = vadd.f32 %v2107_v57, %v855_v49  ;;  %v1891_v49 = vld [vmem:[%s2677_s3 + $0x18] sm:$0xf] }
  0xa1   :  { %v868_v50 = vpop.f32.mrf.mxu1 }
  0xa2   :  { %v869_v4 = vadd.f32 %v868_v50, %v856_v63  ;;  %v2089_v50 = vld [vmem:[%s2677_s3 + $0x48] sm:$0xf0] }
  0xa5   :  { %v881_v51 = vpop.f32.mrf.mxu2 }
  0xa6   :  { %v894_v52 = vpop.f32.mrf.mxu3  ;;  %v857_v53 = vpop.f32.mrf.mxu0  ;;  %v882_v17 = vadd.f32 %v881_v51, %v869_v4  ;;  %v1888_v51 = vor.u32 %v2082_v45, %v1885_v48 }
  0xa7   :  { %v2083_v53 = vld [vmem:[%s2677_s3 + $0x1c] sm:$0xf] }
  0xa8   :  { %v895_v28 = vadd.f32 %v894_v52, %v882_v17  ;;  %v1892_v52 = vor.u32 %v2089_v50, %v1891_v49  ;;  %1283 = vmatpush.bf16.msra.mxu2 %v1888_v51 }
  0xa9   :  { %v870_v54 = vpop.f32.mrf.mxu1 }
  0xaa   :  { %v1893_v54 = vld [vmem:[%s2677_s3 + $0x4c] sm:$0xf0]  ;;  %1296 = vmatpush.bf16.msra.mxu3 %v1892_v52 }
  0xad   :  { %v883_v55 = vpop.f32.mrf.mxu2 }
  0xae   :  { %v896_v56 = vpop.f32.mrf.mxu3  ;;  %v1896_v55 = vor.u32 %v2083_v53, %v1893_v54 }
  0xb0   :  { %1309 = vmatpush.bf16.msrb.mxu0 %v1896_v55 }
  0xbe   :  { %v907_v60 = vpop.f32.mrf.mxu0 }
  0xbf   :  { %v908_v32 = vadd.f32 %v907_v60, %v895_v28  ;;  %v1909_v28 = vld [vmem:[%s2677_s3 + $0x5c] sm:$0xf0] }
  0xc0   :  { %v1912_v33 = vor.u32 %v2085_v27, %v1909_v28 }
  0xc1   :  { %v920_v62 = vpop.f32.mrf.mxu1 }
  0xc2   :  { %v921_v46 = vadd.f32 %v920_v62, %v908_v32 }
  0xc5   :  { %v2483_v0 = vpop.f32.mrf.mxu2 }
  0xc6   :  { %v2485_v1 = vpop.f32.mrf.mxu3  ;;  %v909_v6 = vpop.f32.mrf.mxu0  ;;  %v934_v56 = vadd.f32 %v2483_v0, %v921_v46  ;;  %v1951_v0 = vld [vmem:[%s2677_s3 + $0x88] sm:$0xf]  ;;  %v1046_v46 = vld [vmem:[%s2678_s4] sm:$0xff] }
  0xc7   :  { %v1952_v17 = vor.u32 %v2103_v8, %v1951_v0  ;;  %v1051_v47 = vperm.slane %v1046_v46, 1  ;;  %v1052_v48 = vperm.slane %v1046_v46, 2  ;;  %v1050_v49 = vperm.slane %v1046_v46, 0 }
  0xc8   :  { %v947_v59 = vadd.f32 %v2485_v1, %v934_v56  ;;  %v1053_v50 = vperm.slane %v1046_v46, 3 }
  0xc9   :  { %v922_v14 = vpop.f32.mrf.mxu1 }
  0xca   :  { %v2098_v14 = vld [vmem:[%s2677_s3 + $0x94] sm:$0xf] }
  0xcb   :  { %v1964_v22 = vor.u32 %v2098_v14, %v1961_v15 }
  0xcd   :  { %v935_v21 = vpop.f32.mrf.mxu2 }
  0xce   :  { %v948_v25 = vpop.f32.mrf.mxu3  ;;  %v1960_v21 = vor.u32 %v2104_v13, %v1959_v11 }
  0xcf   :  { %v1907_v25 = vld [vmem:[%s2677_s3 + $0x28] sm:$0xf]  ;;  %s2134_s3 = smov [#allocation2]  }
  0xd0   :  { %v1908_v32 = vor.u32 %v2091_v26, %v1907_v25  ;;  %s1457_s0 = sshll.u32 %s2134_s3, 4  ;;  %s1458_s0 = int_to_ptr.vmem [resolvable:$true] %s1457_s0 }
  0xde   :  { %v959_v57 = vpop.f32.mrf.mxu0 }
  0xdf   :  { %v960_v60 = vadd.f32 %v959_v57, %v947_v59 }
  0xe1   :  { %v972_v58 = vpop.f32.mrf.mxu1 }
  0xe2   :  { %v973_v2 = vadd.f32 %v972_v58, %v960_v60  ;;  %v1054_v60 = vperm.slane %v1046_v46, 4 }
  0xe5   :  { %v985_v61 = vpop.f32.mrf.mxu2 }
  0xe6   :  { %v998_v62 = vpop.f32.mrf.mxu3  ;;  %v961_v63 = vpop.f32.mrf.mxu0  ;;  %v986_v4 = vadd.f32 %v985_v61, %v973_v2  ;;  %v1055_v61 = vperm.slane %v1046_v46, 5  ;;  %v1056_v2 = vperm.slane %v1046_v46, 6 }
  0xe7   :  { %v1057_v63 = vperm.slane %v1046_v46, 7 }
  0xe8   :  { %v999_v6 = vadd.f32 %v998_v62, %v986_v4 }
  0xe9   :  { %v974_v3 = vpop.f32.mrf.mxu1 }
  0xed   :  { %v987_v5 = vpop.f32.mrf.mxu2 }
  0xee   :  { %v1000_v7 = vpop.f32.mrf.mxu3  ;;  %v1011_v1 = vpop.f32.mrf.mxu0 }
  0xef   :  { %v1012_v12 = vadd.f32 %v1011_v1, %v999_v6 }
  0xf1   :  { %1016 = vst.msk [vmem:[#allocation2] sm:$0x3] %vm1015_vm1, %v1012_v12  ;;  %v1017_v16 = vpack.c.bf16 %v1012_v12, %v1012_v12  ;;  %vm1450_vm1 = vmor %vm1449_vm15, %vm1448_vm14 }
  0xf2   :  { %1462 = dma.vmem_to_hbm [thread:$0]  %s1458_s0, 32, %s1460_s24, [#allocation3]  }
  0xf3   :  { %1969 = vmatmul.msk.bf16.vlgmr.msrb.gmra.mxu1 %vm843_vm0, %v1017_v16  ;;  %1970 = vmatmul.msk.bf16.vlgmr.msrb.gmra.mxu2 %vm843_vm0, %v1017_v16 }
  0xf4   :  { %1971 = vmatmul.msk.bf16.vlgmr.msrb.gmra.mxu3 %vm843_vm0, %v1017_v16  ;;  %1972 = vmatmul.msk.bf16.vlgmr.msra.gmra.mxu0 %vm843_vm0, %v1017_v16 }
  0xf5   :  { %1321 = vmatpush.bf16.msrb.mxu1 %v1952_v17  ;;  %1334 = vmatpush.bf16.msrb.mxu2 %v1956_v20 }
  0xf6   :  { %v1013_v31 = vpop.f32.mrf.mxu0  ;;  %1347 = vmatpush.bf16.msrb.mxu3 %v1960_v21  ;;  %1360 = vmatpush.bf16.msra.mxu0 %v1964_v22 }
  0xf9   :  { %1322 = vmatpush.bf16.msrb.mxu1 %v1900_v29  ;;  %1335 = vmatpush.bf16.msrb.mxu2 %v1904_v30  ;;  %v1047_v29 = vld [vmem:[%s2678_s4 + $0x8] sm:$0x1f] }
  0xfa   :  { %1348 = vmatpush.bf16.msrb.mxu3 %v1908_v32  ;;  %1361 = vmatpush.bf16.msra.mxu0 %v1912_v33  ;;  %v1059_v30 = vperm.slane %v1047_v29, 1  ;;  %v1058_v32 = vperm.slane %v1047_v29, 0  ;;  %v1060_v34 = vperm.slane %v1047_v29, 2  ;;  %v1061_v38 = vperm.slane %v1047_v29, 3 }
 0x103   :  { %1973 = vmatmul.msk.bf16.vlgmr.msra.gmra.mxu1 %vm843_vm0, %v1017_v16  ;;  %1974 = vmatmul.msk.bf16.vlgmr.msra.gmra.mxu2 %vm843_vm0, %v1017_v16 }
 0x104   :  { %1975 = vmatmul.msk.bf16.vlgmr.msra.gmra.mxu3 %vm843_vm0, %v1017_v16  ;;  %1976 = vmatmul.msk.bf16.vlgmr.msrb.gmra.mxu0 %vm843_vm0, %v1017_v16 }
 0x105   :  { %1373 = vmatpush.bf16.msra.mxu1 %v1968_v36 }
 0x109   :  { %1374 = vmatpush.bf16.msra.mxu1 %v1916_v39 }
 0x113   :  { %1977 = vmatmul.msk.bf16.vlgmr.msrb.gmra.mxu1 %vm843_vm0, %v1017_v16  ;;  %1978 = vmatmul.msk.bf16.vlgmr.msrb.gmra.mxu2 %vm843_vm0, %v1017_v16 }
 0x114   :  { %1979 = vmatmul.msk.bf16.vlgmr.msrb.gmra.mxu3 %vm843_vm0, %v1017_v16  ;;  %1980 = vmatmul.msk.bf16.vlgmr.msra.gmra.mxu0 %vm843_vm0, %v1017_v16 }
 0x123   :  { %1981 = vmatmul.msk.bf16.vlgmr.msra.gmra.mxu1 %vm843_vm0, %v1017_v16  ;;  %vm1440_vm0 = vcmask 1042432  }
 0x170   :  { %v1220_v40 = vpop.f32.mrf.mxu1 }
 0x171   :  { %v1259_v41 = vpop.f32.mrf.mxu0  ;;  %v1221_v56 = vadd.f32 %v1220_v40, %v1050_v49 }
 0x172   :  { %v1260_v58 = vadd.f32 %v1259_v41, %v1053_v50 }
 0x176   :  { %v1233_v42 = vpop.f32.mrf.mxu2 }
 0x177   :  { %v1246_v43 = vpop.f32.mrf.mxu3  ;;  %v1234_v52 = vadd.f32 %v1233_v42, %v1051_v47  ;;  %v1062_v42 = vperm.slane %v1047_v29, 4 }
 0x178   :  { %v1222_v44 = vpop.f32.mrf.mxu1  ;;  %v1247_v54 = vadd.f32 %v1246_v43, %v1052_v48 }
 0x179   :  { %v1261_v45 = vpop.f32.mrf.mxu0  ;;  %v1380_v59 = vpack.c.bf16 %v1234_v52, %v1221_v56 }
 0x17a   :  { %v1381_v62 = vpack.c.bf16 %v1260_v58, %v1247_v54 }
 0x17b   :  { %v1394_v4 = vrot.slane %v1380_v59, 3 }
 0x17c   :  { %v1395_v0 = vrot.slane %v1381_v62, 6  ;;  %v1396_v8 = vrot.slane %v1381_v62, 1 }
 0x17d   :  { %v1409_v16 = vsel %vm1406_vm2, %v1380_v59, %v1394_v4 }
 0x17e   :  { %v1235_v51 = vpop.f32.mrf.mxu2  ;;  %v1413_v17 = vsel %vm1410_vm3, %v1395_v0, %v1396_v8 }
 0x17f   :  { %v1248_v53 = vpop.f32.mrf.mxu3  ;;  %v1415_v23 = vsel %vm1414_vm4, %v1409_v16, %v1413_v17 }
 0x180   :  { %v1272_v55 = vpop.f32.mrf.mxu1 }
 0x181   :  { %v1311_v57 = vpop.f32.mrf.mxu0  ;;  %v1273_v5 = vadd.f32 %v1272_v55, %v1054_v60 }
 0x182   :  { %v1312_v1 = vadd.f32 %v1311_v57, %v1057_v63 }
 0x186   :  { %v1285_v3 = vpop.f32.mrf.mxu2 }
 0x187   :  { %v1286_v6 = vadd.f32 %v1285_v3, %v1055_v61  ;;  %v1298_v7 = vpop.f32.mrf.mxu3 }
 0x188   :  { %v1299_v9 = vadd.f32 %v1298_v7, %v1056_v2  ;;  %v1274_v10 = vpop.f32.mrf.mxu1 }
 0x189   :  { %v1382_v11 = vpack.c.bf16 %v1286_v6, %v1273_v5  ;;  %v1313_v12 = vpop.f32.mrf.mxu0 }
 0x18a   :  { %v1383_v13 = vpack.c.bf16 %v1312_v1, %v1299_v9 }
 0x18b   :  { %v1397_v14 = vrot.slane %v1382_v11, 4  ;;  %v1398_v15 = vrot.slane %v1382_v11, 7 }
 0x18c   :  { %v1399_v18 = vrot.slane %v1383_v13, 2  ;;  %v1400_v19 = vrot.slane %v1383_v13, 5 }
 0x18d   :  { %v1419_v20 = vsel %vm1416_vm5, %v1397_v14, %v1398_v15 }
 0x18e   :  { %v1423_v21 = vsel %vm1420_vm6, %v1399_v18, %v1400_v19  ;;  %v1287_v22 = vpop.f32.mrf.mxu2 }
 0x18f   :  { %v1425_v24 = vsel %vm1424_vm7, %v1419_v20, %v1423_v21  ;;  %v1300_v25 = vpop.f32.mrf.mxu3 }
 0x190   :  { %v1427_v26 = vsel %vm1426_vm8, %v1415_v23, %v1425_v24  ;;  %v1324_v27 = vpop.f32.mrf.mxu1 }
 0x191   :  { %1444 = vst [vmem:[%s2680_s6] sm:$0xff] %v1427_v26  ;;  %v1363_v28 = vpop.f32.mrf.mxu0  ;;  %v1325_v39 = vadd.f32 %v1324_v27, %v1058_v32 }
 0x192   :  { %v1364_v43 = vadd.f32 %v1363_v28, %v1061_v38 }
 0x196   :  { %v1337_v31 = vpop.f32.mrf.mxu2 }
 0x197   :  { %v1350_v33 = vpop.f32.mrf.mxu3  ;;  %v1338_v36 = vadd.f32 %v1337_v31, %v1059_v30 }
 0x198   :  { %v1326_v35 = vpop.f32.mrf.mxu1  ;;  %v1351_v40 = vadd.f32 %v1350_v33, %v1060_v34 }
 0x199   :  { %v1365_v37 = vpop.f32.mrf.mxu0  ;;  %v1384_v41 = vpack.c.bf16 %v1338_v36, %v1325_v39 }
 0x19a   :  { %v1385_v46 = vpack.c.bf16 %v1364_v43, %v1351_v40 }
 0x19b   :  { %v1401_v48 = vrot.slane %v1384_v41, 3 }
 0x19c   :  { %v1402_v51 = vrot.slane %v1385_v46, 6  ;;  %v1403_v53 = vrot.slane %v1385_v46, 1 }
 0x19d   :  { %v1430_v52 = vsel %vm1406_vm2, %v1384_v41, %v1401_v48 }
 0x19e   :  { %v1339_v44 = vpop.f32.mrf.mxu2  ;;  %v1432_v57 = vsel %vm1414_vm4, %v1430_v52, %v1402_v51 }
 0x19f   :  { %v1352_v45 = vpop.f32.mrf.mxu3 }
 0x1a0   :  { %v1376_v47 = vpop.f32.mrf.mxu1 }
 0x1a1   :  { %v1377_v49 = vadd.f32 %v1376_v47, %v1062_v42 }
 0x1a3   :  { %v1386_v50 = vpack.c.bf16 %v1377_v49, %v1377_v49 }
 0x1a5   :  { %v1404_v54 = vrot.slane %v1386_v50, 4  ;;  %v1405_v55 = vrot.slane %v1386_v50, 7 }
 0x1a7   :  { %v1436_v56 = vsel %vm1433_vm11, %v1403_v53, %v1404_v54 }
 0x1a8   :  { %v1439_v58 = vsel %vm1437_vm13, %v1436_v56, %v1405_v55  ;;  %v1378_v59 = vpop.f32.mrf.mxu1 }
 0x1a9   :  { %v1441_v60 = vsel %vm1440_vm0, %v1432_v57, %v1439_v58 }
 0x1aa   :  { %1451 = vst.msk [vmem:[%s2680_s6 + $0x8] sm:$0x1f] %vm1450_vm1, %v1441_v60 }
 0x1ab   :  { %2132 = dma.done.wait [#allocation3], 32  }
 0x1ac   :  { %2133 = vsyncadd [#allocation3], 4294967264 }
 0x1ad   :  { %1471 = vsyncpa [#allocation3], 1 }

// kernel: sparse_conv_autoencoder_forward.9
= control target key start
LH: loop header
LB: loop body
LE: loop exit
PB: predicated region body
PF: predicated region fallthrough
CT: control target
= control target key end

     0   :  { %vm223_vm0 = vcmask 523264   ;;  %s1437_s1 = inlined_call_operand.vmem [shape: bf16[64,128], index: 1, kind: input, shape index: {}]   ;;  %s1438_s2 = inlined_call_operand.vmem [shape: f32[1,128], index: 2, kind: input, shape index: {}]   ;;  %s1439_s0 = inlined_call_operand.vmem [shape: bf16[392,64], index: 0, kind: input, shape index: {}]   ;;  %s1440_s3 = inlined_call_operand.vmem [shape: f32[392,128], index: 3, kind: output, shape index: {}]  }
   0x1   :  { %v894_v0 = vld [vmem:[%s1437_s1 + $0x18] sm:$0xff]  ;;  %v893_v1 = vld [vmem:[%s1437_s1 + $0x10] sm:$0xff]  ;;  %v892_v2 = vld [vmem:[%s1437_s1 + $0x8] sm:$0xff] }
   0x2   :  { %896 = vmatpush.bf16.msra.mxu2 %v894_v0  ;;  %303 = vmatpush.bf16.msra.mxu0 %v894_v0  ;;  %v891_v3 = vld [vmem:[%s1437_s1] sm:$0xff]  ;;  %v873_v6 = vld [vmem:[%s1439_s0 + $0x30] sm:$0xff]  ;;  %v886_v7 = vld [vmem:[%s1439_s0 + $0x98] sm:$0xff] }
   0x3   :  { %895 = vmatpush.bf16.msra.mxu1 %v894_v0  ;;  %897 = vmatpush.bf16.msra.mxu3 %v894_v0  ;;  %v879_v4 = vld [vmem:[%s1439_s0 + $0x60] sm:$0xff]  ;;  %v880_v8 = vld [vmem:[%s1439_s0 + $0x68] sm:$0xff]  ;;  %v874_v10 = vld [vmem:[%s1439_s0 + $0x38] sm:$0xff] }
   0x4   :  { %v867_v5 = vld [vmem:[%s1439_s0] sm:$0xff]  ;;  %v868_v9 = vld [vmem:[%s1439_s0 + $0x8] sm:$0xff]  ;;  %v881_v12 = vld [vmem:[%s1439_s0 + $0x70] sm:$0xff] }
   0x5   :  { %v887_v11 = vld [vmem:[%s1439_s0 + $0xa0] sm:$0xff]  ;;  %v869_v13 = vld [vmem:[%s1439_s0 + $0x10] sm:$0xff]  ;;  %v888_v15 = vld [vmem:[%s1439_s0 + $0xa8] sm:$0xff] }
   0x6   :  { %899 = vmatpush.bf16.msra.mxu2 %v893_v1  ;;  %304 = vmatpush.bf16.msra.mxu0 %v893_v1  ;;  %v875_v14 = vld [vmem:[%s1439_s0 + $0x40] sm:$0xff]  ;;  %v882_v16 = vld [vmem:[%s1439_s0 + $0x78] sm:$0xff]  ;;  %v876_v18 = vld [vmem:[%s1439_s0 + $0x48] sm:$0xff] }
   0x7   :  { %898 = vmatpush.bf16.msra.mxu1 %v893_v1  ;;  %900 = vmatpush.bf16.msra.mxu3 %v893_v1  ;;  %v870_v17 = vld [vmem:[%s1439_s0 + $0x18] sm:$0xff]  ;;  %v889_v19 = vld [vmem:[%s1439_s0 + $0xb0] sm:$0xff]  ;;  %v883_v20 = vld [vmem:[%s1439_s0 + $0x80] sm:$0xff] }
   0x8   :  { %v871_v21 = vld [vmem:[%s1439_s0 + $0x20] sm:$0xff]  ;;  %v877_v22 = vld [vmem:[%s1439_s0 + $0x50] sm:$0xff]  ;;  %v890_v23 = vld [vmem:[%s1439_s0 + $0xb8] sm:$0xff] }
   0x9   :  { %v63_v24 = vld [vmem:[%s1439_s0 + $0xc0] sm:$0xf]  ;;  %v884_v26 = vld [vmem:[%s1439_s0 + $0x88] sm:$0xff]  ;;  %v878_v28 = vld [vmem:[%s1439_s0 + $0x58] sm:$0xff] }
   0xa   :  { %902 = vmatpush.bf16.msra.mxu2 %v892_v2  ;;  %305 = vmatpush.bf16.msra.mxu0 %v892_v2  ;;  %v173_v25 = vunpack.c.l.b16 %v63_v24  ;;  %v872_v27 = vld [vmem:[%s1439_s0 + $0x28] sm:$0xff]  ;;  %v885_v30 = vld [vmem:[%s1439_s0 + $0x90] sm:$0xff]  ;;  %v1239_v31 = vld [vmem:[%s1438_s2] ss:$0 sm:$0xff] }
   0xb   :  { %901 = vmatpush.bf16.msra.mxu1 %v892_v2  ;;  %903 = vmatpush.bf16.msra.mxu3 %v892_v2 }
   0xc   :  { %v198_v29 = vpack.c.b16 %v173_v25, %v173_v25 }
   0xe   :  { %905 = vmatpush.bf16.msra.mxu2 %v891_v3  ;;  %306 = vmatpush.bf16.msra.mxu0 %v891_v3 }
   0xf   :  { %904 = vmatpush.bf16.msra.mxu1 %v891_v3  ;;  %906 = vmatpush.bf16.msra.mxu3 %v891_v3 }
  0x11   :  { %854 = vmatmul.msk.bf16.vlgmr.msra.gmra.mxu2 %vm223_vm0, %v879_v4  ;;  %842 = vmatmul.msk.bf16.vlgmr.msra.gmra.mxu0 %vm223_vm0, %v867_v5 }
  0x12   :  { %848 = vmatmul.msk.bf16.vlgmr.msra.gmra.mxu1 %vm223_vm0, %v873_v6  ;;  %861 = vmatmul.msk.bf16.vlgmr.msra.gmra.mxu3 %vm223_vm0, %v886_v7 }
  0x21   :  { %855 = vmatmul.msk.bf16.gmra.mxu2 %vm223_vm0, %v880_v8  ;;  %843 = vmatmul.msk.bf16.gmra.mxu0 %vm223_vm0, %v868_v9 }
  0x22   :  { %849 = vmatmul.msk.bf16.gmra.mxu1 %vm223_vm0, %v874_v10  ;;  %862 = vmatmul.msk.bf16.gmra.mxu3 %vm223_vm0, %v887_v11 }
  0x31   :  { %856 = vmatmul.msk.bf16.gmra.mxu2 %vm223_vm0, %v881_v12  ;;  %844 = vmatmul.msk.bf16.gmra.mxu0 %vm223_vm0, %v869_v13 }
  0x32   :  { %850 = vmatmul.msk.bf16.gmra.mxu1 %vm223_vm0, %v875_v14  ;;  %863 = vmatmul.msk.bf16.gmra.mxu3 %vm223_vm0, %v888_v15 }
  0x41   :  { %857 = vmatmul.msk.bf16.gmra.mxu2 %vm223_vm0, %v882_v16  ;;  %845 = vmatmul.msk.bf16.gmra.mxu0 %vm223_vm0, %v870_v17 }
  0x42   :  { %851 = vmatmul.msk.bf16.gmra.mxu1 %vm223_vm0, %v876_v18  ;;  %864 = vmatmul.msk.bf16.gmra.mxu3 %vm223_vm0, %v889_v19 }
  0x51   :  { %858 = vmatmul.msk.bf16.gmra.mxu2 %vm223_vm0, %v883_v20  ;;  %846 = vmatmul.msk.bf16.gmra.mxu0 %vm223_vm0, %v871_v21 }
  0x52   :  { %852 = vmatmul.msk.bf16.gmra.mxu1 %vm223_vm0, %v877_v22  ;;  %865 = vmatmul.msk.bf16.gmra.mxu3 %vm223_vm0, %v890_v23 }
  0x61   :  { %859 = vmatmul.msk.bf16.gmra.mxu2 %vm223_vm0, %v884_v26  ;;  %847 = vmatmul.msk.bf16.gmra.mxu0 %vm223_vm0, %v872_v27 }
  0x62   :  { %853 = vmatmul.msk.bf16.gmra.mxu1 %vm223_vm0, %v878_v28  ;;  %866 = vmatmul.msk.bf16.gmra.mxu3 %vm223_vm0, %v198_v29 }
  0x71   :  { %860 = vmatmul.msk.bf16.gmra.mxu2 %vm223_vm0, %v885_v30 }
  0x8e   :  { %v308_v32 = vpop.f32.mrf.mxu0 }
  0x8f   :  { %v309_v33 = vadd.f32 %v1239_v31, %v308_v32  ;;  %v338_v34 = vpop.f32.mrf.mxu1 }
  0x90   :  { %v339_v35 = vadd.f32 %v1239_v31, %v338_v34 }
  0x91   :  { %v432_v36 = vsub.f32 0.0, %v309_v33 }
  0x92   :  { %v444_v37 = vsub.f32 0.0, %v339_v35 }
  0x93   :  { %v481_v38 = vmul.f32 1.442695, %v432_v36 }
  0x94   :  { %v368_v39 = vpop.f32.mrf.mxu2  ;;  %v505_v40 = vmul.f32 1.442695, %v444_v37 }
  0x95   :  { %v369_v41 = vadd.f32 %v1239_v31, %v368_v39  ;;  %908 = vpow2.f32 %v481_v38  ;;  %v403_v42 = vpop.f32.mrf.mxu3 }
  0x96   :  { %910 = vpow2.f32 %v505_v40  ;;  %v310_v43 = vpop.f32.mrf.mxu0  ;;  %v404_v44 = vadd.f32 %v1239_v31, %v403_v42 }
  0x97   :  { %v456_v45 = vsub.f32 0.0, %v369_v41  ;;  %v311_v46 = vadd.f32 %v1239_v31, %v310_v43  ;;  %v340_v47 = vpop.f32.mrf.mxu1 }
  0x98   :  { %v341_v48 = vadd.f32 %v1239_v31, %v340_v47  ;;  %v470_v49 = vsub.f32 0.0, %v404_v44 }
  0x99   :  { %v529_v50 = vmul.f32 1.442695, %v456_v45  ;;  %v433_v51 = vsub.f32 0.0, %v311_v46 }
  0x9a   :  { %v445_v52 = vsub.f32 0.0, %v341_v48  ;;  %v557_v53 = vmul.f32 1.442695, %v470_v49 }
  0x9b   :  { %v909_v54 = vpop.eup %908  ;;  %912 = vpow2.f32 %v529_v50  ;;  %v483_v55 = vmul.f32 1.442695, %v433_v51 }
  0x9c   :  { %v911_v56 = vpop.eup %910  ;;  %v579_v57 = vadd.f32 1.0, %v909_v54  ;;  %v370_v58 = vpop.f32.mrf.mxu2  ;;  %v507_v59 = vmul.f32 1.442695, %v445_v52  ;;  %914 = vpow2.f32 %v557_v53 }
  0x9d   :  { %v591_v60 = vadd.f32 1.0, %v911_v56  ;;  %v371_v61 = vadd.f32 %v1239_v31, %v370_v58  ;;  %916 = vpow2.f32 %v483_v55  ;;  %v405_v62 = vpop.f32.mrf.mxu3 }
  0x9e   :  { %918 = vrcp.f32 %v579_v57  ;;  %v313_v63 = vpop.f32.mrf.mxu0  ;;  %v406_v0 = vadd.f32 %v1239_v31, %v405_v62 }
  0x9f   :  { %920 = vrcp.f32 %v591_v60  ;;  %v457_v1 = vsub.f32 0.0, %v371_v61  ;;  %v314_v2 = vadd.f32 %v1239_v31, %v313_v63  ;;  %v343_v3 = vpop.f32.mrf.mxu1 }
  0xa0   :  { %922 = vpow2.f32 %v507_v59  ;;  %v344_v4 = vadd.f32 %v1239_v31, %v343_v3  ;;  %v471_v11 = vsub.f32 0.0, %v406_v0 }
  0xa1   :  { %v913_v5 = vpop.eup %912  ;;  %v531_v6 = vmul.f32 1.442695, %v457_v1  ;;  %v434_v7 = vsub.f32 0.0, %v314_v2 }
  0xa2   :  { %v915_v8 = vpop.eup %914  ;;  %v603_v9 = vadd.f32 1.0, %v913_v5  ;;  %v446_v10 = vsub.f32 0.0, %v344_v4  ;;  %v559_v23 = vmul.f32 1.442695, %v471_v11 }
  0xa3   :  { %v917_v12 = vpop.eup %916  ;;  %924 = vpow2.f32 %v531_v6  ;;  %v617_v13 = vadd.f32 1.0, %v915_v8  ;;  %v485_v14 = vmul.f32 1.442695, %v434_v7 }
  0xa4   :  { %v919_v15 = vpop.eup %918  ;;  %926 = vrcp.f32 %v603_v9  ;;  %v580_v16 = vadd.f32 1.0, %v917_v12  ;;  %v373_v17 = vpop.f32.mrf.mxu2  ;;  %v509_v18 = vmul.f32 1.442695, %v446_v10 }
  0xa5   :  { %v921_v19 = vpop.eup %920  ;;  %677 = vst [vmem:[%s1440_s3] sm:$0xff] %v919_v15  ;;  %v374_v20 = vadd.f32 %v1239_v31, %v373_v17  ;;  %928 = vrcp.f32 %v617_v13  ;;  %v408_v21 = vpop.f32.mrf.mxu3 }
  0xa6   :  { %v923_v22 = vpop.eup %922  ;;  %689 = vst [vmem:[%s1440_s3 + $0x60] sm:$0xff] %v921_v19  ;;  %930 = vrcp.f32 %v580_v16  ;;  %v315_v24 = vpop.f32.mrf.mxu0  ;;  %v409_v25 = vadd.f32 %v1239_v31, %v408_v21 }
  0xa7   :  { %v592_v26 = vadd.f32 1.0, %v923_v22  ;;  %v458_v27 = vsub.f32 0.0, %v374_v20  ;;  %932 = vpow2.f32 %v485_v14  ;;  %v316_v28 = vadd.f32 %v1239_v31, %v315_v24  ;;  %v345_v29 = vpop.f32.mrf.mxu1 }
  0xa8   :  { %934 = vpow2.f32 %v509_v18  ;;  %v346_v30 = vadd.f32 %v1239_v31, %v345_v29  ;;  %v472_v32 = vsub.f32 0.0, %v409_v25 }
  0xa9   :  { %v925_v33 = vpop.eup %924  ;;  %936 = vrcp.f32 %v592_v26  ;;  %v533_v34 = vmul.f32 1.442695, %v458_v27  ;;  %v435_v35 = vsub.f32 0.0, %v316_v28 }
  0xaa   :  { %v927_v36 = vpop.eup %926  ;;  %v604_v37 = vadd.f32 1.0, %v925_v33  ;;  %938 = vpow2.f32 %v559_v23  ;;  %v447_v38 = vsub.f32 0.0, %v346_v30  ;;  %v561_v41 = vmul.f32 1.442695, %v472_v32 }
  0xab   :  { %v929_v39 = vpop.eup %928  ;;  %701 = vst [vmem:[%s1440_s3 + $0xc0] sm:$0xff] %v927_v36  ;;  %940 = vpow2.f32 %v533_v34  ;;  %v487_v40 = vmul.f32 1.442695, %v435_v35 }
  0xac   :  { %v931_v42 = vpop.eup %930  ;;  %942 = vrcp.f32 %v604_v37  ;;  %715 = vst [vmem:[%s1440_s3 + $0x130] sm:$0xff] %v929_v39  ;;  %v375_v43 = vpop.f32.mrf.mxu2  ;;  %v511_v44 = vmul.f32 1.442695, %v447_v38 }
  0xad   :  { %v933_v45 = vpop.eup %932  ;;  %678 = vst [vmem:[%s1440_s3 + $0x8] sm:$0xff] %v931_v42  ;;  %v376_v46 = vadd.f32 %v1239_v31, %v375_v43  ;;  %944 = vpow2.f32 %v487_v40  ;;  %v410_v47 = vpop.f32.mrf.mxu3 }
  0xae   :  { %v935_v48 = vpop.eup %934  ;;  %v581_v49 = vadd.f32 1.0, %v933_v45  ;;  %946 = vpow2.f32 %v511_v44  ;;  %v318_v50 = vpop.f32.mrf.mxu0  ;;  %v411_v58 = vadd.f32 %v1239_v31, %v410_v47 }
  0xaf   :  { %v937_v51 = vpop.eup %936  ;;  %v593_v52 = vadd.f32 1.0, %v935_v48  ;;  %v459_v53 = vsub.f32 0.0, %v376_v46  ;;  %948 = vpow2.f32 %v561_v41  ;;  %v319_v54 = vadd.f32 %v1239_v31, %v318_v50  ;;  %v348_v55 = vpop.f32.mrf.mxu1 }
  0xb0   :  { %v939_v56 = vpop.eup %938  ;;  %690 = vst [vmem:[%s1440_s3 + $0x68] sm:$0xff] %v937_v51  ;;  %950 = vrcp.f32 %v581_v49  ;;  %v349_v57 = vadd.f32 %v1239_v31, %v348_v55  ;;  %v473_v6 = vsub.f32 0.0, %v411_v58 }
  0xb1   :  { %v941_v59 = vpop.eup %940  ;;  %952 = vrcp.f32 %v593_v52  ;;  %v535_v60 = vmul.f32 1.442695, %v459_v53  ;;  %v618_v61 = vadd.f32 1.0, %v939_v56  ;;  %v436_v62 = vsub.f32 0.0, %v319_v54 }
  0xb2   :  { %v943_v63 = vpop.eup %942  ;;  %v605_v0 = vadd.f32 1.0, %v941_v59  ;;  %v448_v1 = vsub.f32 0.0, %v349_v57  ;;  %v563_v25 = vmul.f32 1.442695, %v473_v6 }
  0xb3   :  { %v945_v2 = vpop.eup %944  ;;  %702 = vst [vmem:[%s1440_s3 + $0xc8] sm:$0xff] %v943_v63  ;;  %954 = vpow2.f32 %v535_v60  ;;  %v489_v10 = vmul.f32 1.442695, %v436_v62 }
  0xb4   :  { %v947_v3 = vpop.eup %946  ;;  %956 = vrcp.f32 %v605_v0  ;;  %v582_v4 = vadd.f32 1.0, %v945_v2  ;;  %v378_v5 = vpop.f32.mrf.mxu2  ;;  %v513_v14 = vmul.f32 1.442695, %v448_v1 }
  0xb5   :  { %v949_v7 = vpop.eup %948  ;;  %958 = vrcp.f32 %v618_v61  ;;  %v594_v8 = vadd.f32 1.0, %v947_v3  ;;  %v379_v9 = vadd.f32 %v1239_v31, %v378_v5  ;;  %v413_v11 = vpop.f32.mrf.mxu3 }
  0xb6   :  { %v951_v12 = vpop.eup %950  ;;  %960 = vrcp.f32 %v582_v4  ;;  %v619_v13 = vadd.f32 1.0, %v949_v7  ;;  %v320_v15 = vpop.f32.mrf.mxu0  ;;  %v414_v16 = vadd.f32 %v1239_v31, %v413_v11 }
  0xb7   :  { %v953_v17 = vpop.eup %952  ;;  %679 = vst [vmem:[%s1440_s3 + $0x10] sm:$0xff] %v951_v12  ;;  %962 = vrcp.f32 %v594_v8  ;;  %v460_v18 = vsub.f32 0.0, %v379_v9  ;;  %v321_v19 = vadd.f32 %v1239_v31, %v320_v15  ;;  %v350_v20 = vpop.f32.mrf.mxu1 }
  0xb8   :  { %691 = vst [vmem:[%s1440_s3 + $0x70] sm:$0xff] %v953_v17  ;;  %964 = vrcp.f32 %v619_v13  ;;  %v351_v21 = vadd.f32 %v1239_v31, %v350_v20  ;;  %v474_v22 = vsub.f32 0.0, %v414_v16 }
  0xb9   :  { %v955_v23 = vpop.eup %954  ;;  %v537_v24 = vmul.f32 1.442695, %v460_v18  ;;  %966 = vpow2.f32 %v489_v10  ;;  %v437_v26 = vsub.f32 0.0, %v321_v19 }
  0xba   :  { %v957_v27 = vpop.eup %956  ;;  %v606_v28 = vadd.f32 1.0, %v955_v23  ;;  %968 = vpow2.f32 %v513_v14  ;;  %v449_v29 = vsub.f32 0.0, %v351_v21  ;;  %v565_v36 = vmul.f32 1.442695, %v474_v22 }
  0xbb   :  { %v959_v30 = vpop.eup %958  ;;  %703 = vst [vmem:[%s1440_s3 + $0xd0] sm:$0xff] %v957_v27  ;;  %970 = vpow2.f32 %v537_v24  ;;  %v491_v32 = vmul.f32 1.442695, %v437_v26 }
  0xbc   :  { %v961_v33 = vpop.eup %960  ;;  %972 = vrcp.f32 %v606_v28  ;;  %716 = vst [vmem:[%s1440_s3 + $0x138] sm:$0xff] %v959_v30  ;;  %v380_v34 = vpop.f32.mrf.mxu2  ;;  %v515_v35 = vmul.f32 1.442695, %v449_v29 }
  0xbd   :  { %v963_v37 = vpop.eup %962  ;;  %680 = vst [vmem:[%s1440_s3 + $0x18] sm:$0xff] %v961_v33  ;;  %v381_v38 = vadd.f32 %v1239_v31, %v380_v34  ;;  %974 = vpow2.f32 %v563_v25  ;;  %v415_v39 = vpop.f32.mrf.mxu3 }
  0xbe   :  { %v965_v40 = vpop.eup %964  ;;  %692 = vst [vmem:[%s1440_s3 + $0x78] sm:$0xff] %v963_v37  ;;  %976 = vpow2.f32 %v491_v32  ;;  %v323_v41 = vpop.f32.mrf.mxu0  ;;  %v416_v49 = vadd.f32 %v1239_v31, %v415_v39 }
  0xbf   :  { %v967_v42 = vpop.eup %966  ;;  %717 = vst [vmem:[%s1440_s3 + $0x140] sm:$0xff] %v965_v40  ;;  %v461_v43 = vsub.f32 0.0, %v381_v38  ;;  %978 = vpow2.f32 %v515_v35  ;;  %v324_v44 = vadd.f32 %v1239_v31, %v323_v41  ;;  %v353_v45 = vpop.f32.mrf.mxu1 }
  0xc0   :  { %v969_v46 = vpop.eup %968  ;;  %v583_v47 = vadd.f32 1.0, %v967_v42  ;;  %980 = vpow2.f32 %v565_v36  ;;  %v354_v48 = vadd.f32 %v1239_v31, %v353_v45  ;;  %v475_v61 = vsub.f32 0.0, %v416_v49 }
  0xc1   :  { %v971_v50 = vpop.eup %970  ;;  %v595_v51 = vadd.f32 1.0, %v969_v46  ;;  %v539_v52 = vmul.f32 1.442695, %v461_v43  ;;  %v438_v55 = vsub.f32 0.0, %v324_v44 }
  0xc2   :  { %v973_v53 = vpop.eup %972  ;;  %v607_v54 = vadd.f32 1.0, %v971_v50  ;;  %982 = vrcp.f32 %v583_v47  ;;  %v450_v60 = vsub.f32 0.0, %v354_v48  ;;  %v567_v13 = vmul.f32 1.442695, %v475_v61 }
  0xc3   :  { %v975_v56 = vpop.eup %974  ;;  %704 = vst [vmem:[%s1440_s3 + $0xd8] sm:$0xff] %v973_v53  ;;  %984 = vrcp.f32 %v595_v51  ;;  %v493_v4 = vmul.f32 1.442695, %v438_v55 }
  0xc4   :  { %v977_v57 = vpop.eup %976  ;;  %986 = vrcp.f32 %v607_v54  ;;  %v620_v58 = vadd.f32 1.0, %v975_v56  ;;  %v383_v59 = vpop.f32.mrf.mxu2  ;;  %v517_v12 = vmul.f32 1.442695, %v450_v60 }
  0xc5   :  { %v979_v62 = vpop.eup %978  ;;  %988 = vpow2.f32 %v539_v52  ;;  %v584_v63 = vadd.f32 1.0, %v977_v57  ;;  %v384_v0 = vadd.f32 %v1239_v31, %v383_v59  ;;  %v418_v1 = vpop.f32.mrf.mxu3 }
  0xc6   :  { %v981_v2 = vpop.eup %980  ;;  %990 = vrcp.f32 %v620_v58  ;;  %v596_v3 = vadd.f32 1.0, %v979_v62  ;;  %v325_v5 = vpop.f32.mrf.mxu0  ;;  %v419_v6 = vadd.f32 %v1239_v31, %v418_v1 }
  0xc7   :  { %992 = vrcp.f32 %v584_v63  ;;  %v462_v7 = vsub.f32 0.0, %v384_v0  ;;  %v621_v8 = vadd.f32 1.0, %v981_v2  ;;  %v326_v9 = vadd.f32 %v1239_v31, %v325_v5  ;;  %v355_v10 = vpop.f32.mrf.mxu1 }
  0xc8   :  { %v983_v11 = vpop.eup %982  ;;  %994 = vrcp.f32 %v596_v3  ;;  %v356_v14 = vadd.f32 %v1239_v31, %v355_v10  ;;  %v476_v18 = vsub.f32 0.0, %v419_v6 }
  0xc9   :  { %v985_v15 = vpop.eup %984  ;;  %681 = vst [vmem:[%s1440_s3 + $0x20] sm:$0xff] %v983_v11  ;;  %v541_v16 = vmul.f32 1.442695, %v462_v7  ;;  %996 = vrcp.f32 %v621_v8  ;;  %v439_v17 = vsub.f32 0.0, %v326_v9 }
  0xca   :  { %v987_v19 = vpop.eup %986  ;;  %693 = vst [vmem:[%s1440_s3 + $0x80] sm:$0xff] %v985_v15  ;;  %998 = vpow2.f32 %v493_v4  ;;  %v451_v20 = vsub.f32 0.0, %v356_v14  ;;  %v569_v29 = vmul.f32 1.442695, %v476_v18 }
  0xcb   :  { %v989_v21 = vpop.eup %988  ;;  %705 = vst [vmem:[%s1440_s3 + $0xe0] sm:$0xff] %v987_v19  ;;  %1000 = vpow2.f32 %v541_v16  ;;  %v495_v22 = vmul.f32 1.442695, %v439_v17 }
  0xcc   :  { %v991_v23 = vpop.eup %990  ;;  %v608_v24 = vadd.f32 1.0, %v989_v21  ;;  %1002 = vpow2.f32 %v517_v12  ;;  %v385_v25 = vpop.f32.mrf.mxu2  ;;  %v519_v26 = vmul.f32 1.442695, %v451_v20 }
  0xcd   :  { %v993_v27 = vpop.eup %992  ;;  %718 = vst [vmem:[%s1440_s3 + $0x148] sm:$0xff] %v991_v23  ;;  %v386_v28 = vadd.f32 %v1239_v31, %v385_v25  ;;  %1004 = vpow2.f32 %v567_v13  ;;  %v420_v30 = vpop.f32.mrf.mxu3 }
  0xce   :  { %v995_v32 = vpop.eup %994  ;;  %1006 = vrcp.f32 %v608_v24  ;;  %682 = vst [vmem:[%s1440_s3 + $0x28] sm:$0xff] %v993_v27  ;;  %v328_v33 = vpop.f32.mrf.mxu0  ;;  %v421_v45 = vadd.f32 %v1239_v31, %v420_v30 }
  0xcf   :  { %v997_v34 = vpop.eup %996  ;;  %694 = vst [vmem:[%s1440_s3 + $0x88] sm:$0xff] %v995_v32  ;;  %v463_v35 = vsub.f32 0.0, %v386_v28  ;;  %1008 = vpow2.f32 %v495_v22  ;;  %v358_v36 = vpop.f32.mrf.mxu1  ;;  %v329_v38 = vadd.f32 %v1239_v31, %v328_v33 }
  0xd0   :  { %v999_v37 = vpop.eup %998  ;;  %719 = vst [vmem:[%s1440_s3 + $0x150] sm:$0xff] %v997_v34  ;;  %1010 = vpow2.f32 %v519_v26  ;;  %v359_v41 = vadd.f32 %v1239_v31, %v358_v36  ;;  %v477_v58 = vsub.f32 0.0, %v421_v45 }
  0xd1   :  { %v1001_v39 = vpop.eup %1000  ;;  %v585_v40 = vadd.f32 1.0, %v999_v37  ;;  %1012 = vpow2.f32 %v569_v29  ;;  %v543_v44 = vmul.f32 1.442695, %v463_v35  ;;  %v440_v51 = vsub.f32 0.0, %v329_v38 }
  0xd2   :  { %v1003_v42 = vpop.eup %1002  ;;  %v609_v43 = vadd.f32 1.0, %v1001_v39  ;;  %v452_v54 = vsub.f32 0.0, %v359_v41  ;;  %v571_v10 = vmul.f32 1.442695, %v477_v58 }
  0xd3   :  { %v1005_v46 = vpop.eup %1004  ;;  %1014 = vrcp.f32 %v585_v40  ;;  %v597_v47 = vadd.f32 1.0, %v1003_v42  ;;  %v497_v3 = vmul.f32 1.442695, %v440_v51 }
  0xd4   :  { %v1007_v48 = vpop.eup %1006  ;;  %1016 = vrcp.f32 %v609_v43  ;;  %v622_v49 = vadd.f32 1.0, %v1005_v46  ;;  %v388_v50 = vpop.f32.mrf.mxu2  ;;  %v521_v7 = vmul.f32 1.442695, %v452_v54 }
  0xd5   :  { %v1009_v52 = vpop.eup %1008  ;;  %706 = vst [vmem:[%s1440_s3 + $0xe8] sm:$0xff] %v1007_v48  ;;  %1018 = vrcp.f32 %v597_v47  ;;  %v389_v53 = vadd.f32 %v1239_v31, %v388_v50  ;;  %v423_v55 = vpop.f32.mrf.mxu3 }
  0xd6   :  { %v1011_v56 = vpop.eup %1010  ;;  %1020 = vpow2.f32 %v543_v44  ;;  %v586_v57 = vadd.f32 1.0, %v1009_v52  ;;  %v330_v59 = vpop.f32.mrf.mxu0  ;;  %v424_v60 = vadd.f32 %v1239_v31, %v423_v55 }
  0xd7   :  { %v1013_v61 = vpop.eup %1012  ;;  %1022 = vrcp.f32 %v622_v49  ;;  %v598_v62 = vadd.f32 1.0, %v1011_v56  ;;  %v464_v63 = vsub.f32 0.0, %v389_v53  ;;  %v331_v0 = vadd.f32 %v1239_v31, %v330_v59  ;;  %v360_v1 = vpop.f32.mrf.mxu1 }
  0xd8   :  { %1024 = vrcp.f32 %v586_v57  ;;  %v623_v2 = vadd.f32 1.0, %v1013_v61  ;;  %v361_v4 = vadd.f32 %v1239_v31, %v360_v1  ;;  %v478_v12 = vsub.f32 0.0, %v424_v60 }
  0xd9   :  { %v1015_v5 = vpop.eup %1014  ;;  %1026 = vrcp.f32 %v598_v62  ;;  %v545_v6 = vmul.f32 1.442695, %v464_v63  ;;  %v441_v8 = vsub.f32 0.0, %v331_v0 }
  0xda   :  { %v1017_v9 = vpop.eup %1016  ;;  %683 = vst [vmem:[%s1440_s3 + $0x30] sm:$0xff] %v1015_v5  ;;  %1028 = vrcp.f32 %v623_v2  ;;  %v453_v11 = vsub.f32 0.0, %v361_v4  ;;  %v573_v23 = vmul.f32 1.442695, %v478_v12 }
  0xdb   :  { %v1019_v13 = vpop.eup %1018  ;;  %707 = vst [vmem:[%s1440_s3 + $0xf0] sm:$0xff] %v1017_v9  ;;  %1030 = vpow2.f32 %v545_v6  ;;  %v499_v16 = vmul.f32 1.442695, %v441_v8 }
  0xdc   :  { %v1021_v14 = vpop.eup %1020  ;;  %695 = vst [vmem:[%s1440_s3 + $0x90] sm:$0xff] %v1019_v13  ;;  %1032 = vpow2.f32 %v497_v3  ;;  %v390_v15 = vpop.f32.mrf.mxu2  ;;  %v523_v20 = vmul.f32 1.442695, %v453_v11 }
  0xdd   :  { %v1023_v17 = vpop.eup %1022  ;;  %v610_v18 = vadd.f32 1.0, %v1021_v14  ;;  %1034 = vpow2.f32 %v521_v7  ;;  %v391_v19 = vadd.f32 %v1239_v31, %v390_v15  ;;  %v425_v21 = vpop.f32.mrf.mxu3 }
  0xde   :  { %v1025_v22 = vpop.eup %1024  ;;  %720 = vst [vmem:[%s1440_s3 + $0x158] sm:$0xff] %v1023_v17  ;;  %1036 = vpow2.f32 %v571_v10  ;;  %v333_v24 = vpop.f32.mrf.mxu0  ;;  %v426_v37 = vadd.f32 %v1239_v31, %v425_v21 }
  0xdf   :  { %v1027_v25 = vpop.eup %1026  ;;  %1038 = vrcp.f32 %v610_v18  ;;  %684 = vst [vmem:[%s1440_s3 + $0x38] sm:$0xff] %v1025_v22  ;;  %v465_v26 = vsub.f32 0.0, %v391_v19  ;;  %v334_v27 = vadd.f32 %v1239_v31, %v333_v24  ;;  %v363_v28 = vpop.f32.mrf.mxu1 }
  0xe0   :  { %v1029_v29 = vpop.eup %1028  ;;  %696 = vst [vmem:[%s1440_s3 + $0x98] sm:$0xff] %v1027_v25  ;;  %1040 = vpow2.f32 %v499_v16  ;;  %v364_v36 = vadd.f32 %v1239_v31, %v363_v28  ;;  %v479_v50 = vsub.f32 0.0, %v426_v37 }
  0xe1   :  { %v1031_v30 = vpop.eup %1030  ;;  %721 = vst [vmem:[%s1440_s3 + $0x160] sm:$0xff] %v1029_v29  ;;  %v547_v32 = vmul.f32 1.442695, %v465_v26  ;;  %1042 = vpow2.f32 %v523_v20  ;;  %v442_v33 = vsub.f32 0.0, %v334_v27 }
  0xe2   :  { %v1033_v34 = vpop.eup %1032  ;;  %v611_v35 = vadd.f32 1.0, %v1031_v30  ;;  %1044 = vpow2.f32 %v573_v23  ;;  %v454_v49 = vsub.f32 0.0, %v364_v36  ;;  %v575_v6 = vmul.f32 1.442695, %v479_v50 }
  0xe3   :  { %v1035_v38 = vpop.eup %1034  ;;  %v587_v39 = vadd.f32 1.0, %v1033_v34  ;;  %1046 = vpow2.f32 %v547_v32  ;;  %v501_v43 = vmul.f32 1.442695, %v442_v33 }
  0xe4   :  { %v1037_v40 = vpop.eup %1036  ;;  %1048 = vrcp.f32 %v611_v35  ;;  %v599_v41 = vadd.f32 1.0, %v1035_v38  ;;  %v393_v42 = vpop.f32.mrf.mxu2  ;;  %v525_v3 = vmul.f32 1.442695, %v454_v49 }
  0xe5   :  { %v1039_v44 = vpop.eup %1038  ;;  %1050 = vrcp.f32 %v587_v39  ;;  %v624_v45 = vadd.f32 1.0, %v1037_v40  ;;  %v394_v46 = vadd.f32 %v1239_v31, %v393_v42  ;;  %v428_v47 = vpop.f32.mrf.mxu3 }
  0xe6   :  { %v1041_v48 = vpop.eup %1040  ;;  %708 = vst [vmem:[%s1440_s3 + $0xf8] sm:$0xff] %v1039_v44  ;;  %1052 = vrcp.f32 %v599_v41  ;;  %v335_v51 = vpop.f32.mrf.mxu0  ;;  %v429_v60 = vadd.f32 %v1239_v31, %v428_v47 }
  0xe7   :  { %v1043_v52 = vpop.eup %1042  ;;  %1054 = vrcp.f32 %v624_v45  ;;  %v588_v53 = vadd.f32 1.0, %v1041_v48  ;;  %v466_v54 = vsub.f32 0.0, %v394_v46  ;;  %v336_v55 = vadd.f32 %v1239_v31, %v335_v51  ;;  %v365_v56 = vpop.f32.mrf.mxu1 }
  0xe8   :  { %v1045_v57 = vpop.eup %1044  ;;  %v600_v58 = vadd.f32 1.0, %v1043_v52  ;;  %1056 = vpow2.f32 %v501_v43  ;;  %v366_v59 = vadd.f32 %v1239_v31, %v365_v56  ;;  %v480_v12 = vsub.f32 0.0, %v429_v60 }
  0xe9   :  { %v1047_v61 = vpop.eup %1046  ;;  %1058 = vrcp.f32 %v588_v53  ;;  %v549_v62 = vmul.f32 1.442695, %v466_v54  ;;  %v625_v63 = vadd.f32 1.0, %v1045_v57  ;;  %v443_v0 = vsub.f32 0.0, %v336_v55 }
  0xea   :  { %v1049_v1 = vpop.eup %1048  ;;  %v612_v2 = vadd.f32 1.0, %v1047_v61  ;;  %1060 = vrcp.f32 %v600_v58  ;;  %v455_v4 = vsub.f32 0.0, %v366_v59  ;;  %v577_v22 = vmul.f32 1.442695, %v480_v12 }
  0xeb   :  { %v1051_v5 = vpop.eup %1050  ;;  %709 = vst [vmem:[%s1440_s3 + $0x100] sm:$0xff] %v1049_v1  ;;  %1062 = vpow2.f32 %v549_v62  ;;  %v503_v9 = vmul.f32 1.442695, %v443_v0 }
  0xec   :  { %v1053_v7 = vpop.eup %1052  ;;  %685 = vst [vmem:[%s1440_s3 + $0x40] sm:$0xff] %v1051_v5  ;;  %1064 = vrcp.f32 %v612_v2  ;;  %v395_v8 = vpop.f32.mrf.mxu2  ;;  %v527_v15 = vmul.f32 1.442695, %v455_v4 }
  0xed   :  { %v1055_v10 = vpop.eup %1054  ;;  %697 = vst [vmem:[%s1440_s3 + $0xa0] sm:$0xff] %v1053_v7  ;;  %1066 = vrcp.f32 %v625_v63  ;;  %v396_v11 = vadd.f32 %v1239_v31, %v395_v8  ;;  %v430_v13 = vpop.f32.mrf.mxu3 }
  0xee   :  { %v1057_v14 = vpop.eup %1056  ;;  %722 = vst [vmem:[%s1440_s3 + $0x168] sm:$0xff] %v1055_v10  ;;  %1068 = vpow2.f32 %v525_v3 }
  0xef   :  { %v1059_v16 = vpop.eup %1058  ;;  %v589_v17 = vadd.f32 1.0, %v1057_v14  ;;  %v467_v18 = vsub.f32 0.0, %v396_v11  ;;  %1070 = vpow2.f32 %v575_v6 }
  0xf0   :  { %v1061_v19 = vpop.eup %1060  ;;  %686 = vst [vmem:[%s1440_s3 + $0x48] sm:$0xff] %v1059_v16  ;;  %1072 = vpow2.f32 %v503_v9 }
  0xf1   :  { %v1063_v20 = vpop.eup %1062  ;;  %698 = vst [vmem:[%s1440_s3 + $0xa8] sm:$0xff] %v1061_v19  ;;  %1074 = vrcp.f32 %v589_v17  ;;  %v551_v21 = vmul.f32 1.442695, %v467_v18 }
  0xf2   :  { %v1065_v23 = vpop.eup %1064  ;;  %v613_v24 = vadd.f32 1.0, %v1063_v20  ;;  %1076 = vpow2.f32 %v527_v15 }
  0xf3   :  { %v1067_v25 = vpop.eup %1066  ;;  %710 = vst [vmem:[%s1440_s3 + $0x108] sm:$0xff] %v1065_v23  ;;  %1078 = vpow2.f32 %v551_v21 }
  0xf4   :  { %v1069_v26 = vpop.eup %1068  ;;  %1080 = vrcp.f32 %v613_v24  ;;  %723 = vst [vmem:[%s1440_s3 + $0x170] sm:$0xff] %v1067_v25  ;;  %v398_v27 = vpop.f32.mrf.mxu2 }
  0xf5   :  { %v1071_v28 = vpop.eup %1070  ;;  %v601_v29 = vadd.f32 1.0, %v1069_v26  ;;  %v399_v30 = vadd.f32 %v1239_v31, %v398_v27  ;;  %1082 = vpow2.f32 %v577_v22 }
  0xf6   :  { %v1073_v32 = vpop.eup %1072  ;;  %v626_v33 = vadd.f32 1.0, %v1071_v28 }
  0xf7   :  { %v1075_v34 = vpop.eup %1074  ;;  %1084 = vrcp.f32 %v601_v29  ;;  %v590_v35 = vadd.f32 1.0, %v1073_v32  ;;  %v468_v36 = vsub.f32 0.0, %v399_v30 }
  0xf8   :  { %v1077_v37 = vpop.eup %1076  ;;  %687 = vst [vmem:[%s1440_s3 + $0x50] sm:$0xff] %v1075_v34  ;;  %1086 = vrcp.f32 %v626_v33 }
  0xf9   :  { %v1079_v38 = vpop.eup %1078  ;;  %1088 = vrcp.f32 %v590_v35  ;;  %v602_v39 = vadd.f32 1.0, %v1077_v37  ;;  %v553_v40 = vmul.f32 1.442695, %v468_v36 }
  0xfa   :  { %v1081_v41 = vpop.eup %1080  ;;  %v614_v42 = vadd.f32 1.0, %v1079_v38 }
  0xfb   :  { %v1083_v43 = vpop.eup %1082  ;;  %711 = vst [vmem:[%s1440_s3 + $0x110] sm:$0xff] %v1081_v41  ;;  %1090 = vrcp.f32 %v602_v39 }
  0xfc   :  { %1092 = vrcp.f32 %v614_v42  ;;  %v627_v44 = vadd.f32 1.0, %v1083_v43  ;;  %v400_v45 = vpop.f32.mrf.mxu2 }
  0xfd   :  { %v1085_v46 = vpop.eup %1084  ;;  %1094 = vpow2.f32 %v553_v40  ;;  %v401_v47 = vadd.f32 %v1239_v31, %v400_v45 }
  0xfe   :  { %v1087_v48 = vpop.eup %1086  ;;  %699 = vst [vmem:[%s1440_s3 + $0xb0] sm:$0xff] %v1085_v46  ;;  %1096 = vrcp.f32 %v627_v44 }
  0xff   :  { %v1089_v49 = vpop.eup %1088  ;;  %724 = vst [vmem:[%s1440_s3 + $0x178] sm:$0xff] %v1087_v48  ;;  %v469_v50 = vsub.f32 0.0, %v401_v47 }
 0x100   :  { %688 = vst [vmem:[%s1440_s3 + $0x58] sm:$0xff] %v1089_v49 }
 0x101   :  { %v1091_v51 = vpop.eup %1090  ;;  %v555_v52 = vmul.f32 1.442695, %v469_v50 }
 0x102   :  { %v1093_v53 = vpop.eup %1092  ;;  %700 = vst [vmem:[%s1440_s3 + $0xb8] sm:$0xff] %v1091_v51 }
 0x103   :  { %v1095_v31 = vpop.eup %1094  ;;  %712 = vst [vmem:[%s1440_s3 + $0x118] sm:$0xff] %v1093_v53  ;;  %1098 = vpow2.f32 %v555_v52 }
 0x104   :  { %v1097_v54 = vpop.eup %1096  ;;  %v615_v55 = vadd.f32 1.0, %v1095_v31 }
 0x105   :  { %725 = vst [vmem:[%s1440_s3 + $0x180] sm:$0xff] %v1097_v54 }
 0x106   :  { %1100 = vrcp.f32 %v615_v55 }
 0x109   :  { %v1099_v56 = vpop.eup %1098 }
 0x10a   :  { %v616_v57 = vadd.f32 1.0, %v1099_v56 }
 0x10c   :  { %v1101_v58 = vpop.eup %1100  ;;  %1102 = vrcp.f32 %v616_v57 }
 0x10d   :  { %713 = vst [vmem:[%s1440_s3 + $0x120] sm:$0xff] %v1101_v58 }
 0x112   :  { %v1103_v59 = vpop.eup %1102 }
 0x113   :  { %714 = vst [vmem:[%s1440_s3 + $0x128] sm:$0xff] %v1103_v59 }

</bundles_post_ra>
